<compile_context>
chip_gen: v7x
topology: tpu7x:2x2x1
jax: 0.10.0
libtpu: 0.0.40
codegen_flags: <defaults>
</compile_context>

<pallas_src>
import functools

import numpy as np
import jax
import jax.numpy as jnp
from jax.experimental import pallas as pl
from jax.experimental.pallas import tpu as pltpu

LANE = 128  # lane width / channel count of every internal branch


# ----------------------------------------------------------------------------
# Fused Pallas kernel (one grid step == one image)
# ----------------------------------------------------------------------------
def _aspp_fused_kernel(hw, dil_taps, pool_col,
                       x_ref, p_ref, wx_ref, w3_ref, w4_ref, aff_ref, o_ref):
    """Whole ASPP forward for one image, entirely in VMEM.

    x_ref   : (1, HW, Cin)    bf16  input image, spatial dims flattened
    p_ref   : (nS, HW, HW)    f32   0/1 shift-and-mask matrices (one per distinct tap shift)
    wx_ref  : (Cin, NB*128)   bf16  [1x1_1 | live d6 taps... | d12 center | d18 center | 1x1_2(pool)]
    w3_ref  : (5, 128, 128)   bf16  conv_1x1_3 weight split along its 640 input channels
    w4_ref  : (128, 128)      bf16  conv_1x1_4 weight, output channels zero-padded to 128
    aff_ref : (13, 1, 128)    f32   folded BN scale/shift rows + final conv bias
    o_ref   : (1, HW, 128)    f32   logits (channels zero-padded to 128)
    """
    x = x_ref[0]                                                   # (HW, Cin) bf16

    # One big K=Cin matmul covering every conv that reads the input directly.
    y = jnp.dot(x, wx_ref[...], preferred_element_type=jnp.float32)  # (HW, NB*128) f32

    def blk(c):
        return y[:, c * LANE:(c + 1) * LANE]

    def bn_relu(v, row):
        return jnp.maximum(v * aff_ref[row] + aff_ref[row + 1], 0.0)

    branches = [bn_relu(blk(0), 0)]                                # 1x1 branch

    # three dilated 3x3 branches (dead taps already dropped at trace time)
    for bi, taps in enumerate(dil_taps):
        acc = jnp.zeros((hw, LANE), jnp.float32)
        for col, sidx in taps:
            contrib = blk(col)
            if sidx >= 0:  # shifted tap: gather+mask rows via a 0/1 matmul (stays on MXU)
                contrib = jnp.dot(p_ref[sidx], contrib,
                                  preferred_element_type=jnp.float32)
            acc = acc + contrib
        branches.append(bn_relu(acc, 2 + 2 * bi))

    # global-average-pool branch: mean commutes with the 1x1 conv already applied in `y`;
    # bilinear(align_corners) upsample from a 1x1 source is an exact broadcast.
    pooled = jnp.mean(blk(pool_col), axis=0, keepdims=True)        # (1, 128)
    pooled = bn_relu(pooled, 8)
    branches.append(jnp.broadcast_to(pooled, (hw, LANE)))

    # conv_1x1_3 over the 640-channel concat == sum of five (HW,128)x(128,128) dots
    facc = jnp.zeros((hw, LANE), jnp.float32)
    for i, b in enumerate(branches):
        facc = facc + jnp.dot(b.astype(jnp.bfloat16), w3_ref[i],
                              preferred_element_type=jnp.float32)
    fused = jnp.maximum(facc * aff_ref[10] + aff_ref[11], 0.0)

    # final 1x1 conv (lane-padded output channels, bias in aff row 12)
    logits = jnp.dot(fused.astype(jnp.bfloat16), w4_ref[...],
                     preferred_element_type=jnp.float32) + aff_ref[12]
    o_ref[0] = logits.astype(o_ref.dtype)


# ----------------------------------------------------------------------------
# BN folding
# ----------------------------------------------------------------------------
def _fold_bn(conv_bias, bn_params, eps=1e-5):
    gamma, beta, mean, var = bn_params
    scale = gamma / jnp.sqrt(var + eps)
    shift = (conv_bias - mean) * scale + beta
    return scale, shift


# ----------------------------------------------------------------------------
# ASPP forward (Pallas)
# ----------------------------------------------------------------------------
def aspp_pallas(x_nchw, p, num_classes):
    assert num_classes <= LANE, "final output channels padded to one lane group"
    N, C, H, W = x_nchw.shape
    HW = H * W
    dilations = (6, 12, 18)

    x = jnp.transpose(x_nchw, (0, 2, 3, 1)).reshape(N, HW, C).astype(jnp.bfloat16)

    # ---- static tap analysis (trace time): drop taps that only read zero padding ----
    shift_index = {}          # (dy, dx) -> row in P
    shifts = []
    dil_taps = []             # per branch: tuple of (weight column block, shift idx | -1)
    wx_cols = [p["conv_1x1_1"][0].reshape(LANE, C).T]      # col block 0: 1x1 branch
    col = 1
    for cname, d in zip(("conv_3x3_1", "conv_3x3_2", "conv_3x3_3"), dilations):
        w3x3 = p[cname][0]
        taps = []
        for ky in range(3):
            for kx in range(3):
                dy, dx = (ky - 1) * d, (kx - 1) * d
                if abs(dy) >= H or abs(dx) >= W:
                    continue                                # tap reads only zero padding
                if dy == 0 and dx == 0:
                    sidx = -1
                else:
                    if (dy, dx) not in shift_index:
                        shift_index[(dy, dx)] = len(shifts)
                        shifts.append((dy, dx))
                    sidx = shift_index[(dy, dx)]
                wx_cols.append(w3x3[:, :, ky, kx].T)        # (Cin, 128)
                taps.append((col, sidx))
                col += 1
        dil_taps.append(tuple(taps))
    wx_cols.append(p["conv_1x1_2"][0].reshape(LANE, C).T)   # pool-branch 1x1
    pool_col = col
    nb = len(wx_cols)

    wx = jnp.concatenate(wx_cols, axis=1).astype(jnp.bfloat16)      # (Cin, NB*128)

    # ---- 0/1 shift-and-mask matrices, built as compile-time constants (numpy) ----
    m = np.arange(HW)
    yy, xx = m // W, m % W
    if shifts:
        pmats = []
        for dy, dx in shifts:
            valid = (yy + dy >= 0) & (yy + dy < H) & (xx + dx >= 0) & (xx + dx < W)
            src = m + dy * W + dx
            pmats.append(((m[None, :] == src[:, None]) & valid[:, None]))
        P = np.stack(pmats, 0).astype(np.float32)
    else:
        P = np.zeros((1, HW, HW), np.float32)
    P = jnp.asarray(P)

    # ---- folded BN affines + final conv bias packed into one (13, 1, 128) table ----
    rows = []
    for cname, bname in (("conv_1x1_1", "bn_conv_1x1_1"),
                         ("conv_3x3_1", "bn_conv_3x3_1"),
                         ("conv_3x3_2", "bn_conv_3x3_2"),
                         ("conv_3x3_3", "bn_conv_3x3_3"),
                         ("conv_1x1_2", "bn_conv_1x1_2"),
                         ("conv_1x1_3", "bn_conv_1x1_3")):
        s, b = _fold_bn(p[cname][1], p[bname])
        rows += [s, b]
    w4, b4 = p["conv_1x1_4"]
    rows.append(jnp.pad(b4, (0, LANE - num_classes)))
    aff = jnp.stack(rows, 0).astype(jnp.float32).reshape(13, 1, LANE)

    w3 = p["conv_1x1_3"][0].reshape(LANE, 5 * LANE).T.reshape(5, LANE, LANE).astype(jnp.bfloat16)
    w4p = jnp.pad(w4.reshape(num_classes, LANE).T,
                  ((0, 0), (0, LANE - num_classes))).astype(jnp.bfloat16)

    kernel = functools.partial(_aspp_fused_kernel, HW, tuple(dil_taps), pool_col)

    out = pl.pallas_call(
        kernel,
        out_shape=jax.ShapeDtypeStruct((N, HW, LANE), jnp.float32),
        grid_spec=pltpu.PrefetchScalarGridSpec(
            num_scalar_prefetch=0,
            grid=(N,),
            in_specs=[
                pl.BlockSpec((1, HW, C), lambda i: (i, 0, 0)),       # x (per-image tile)
                pl.BlockSpec(P.shape, lambda i: (0, 0, 0)),          # shift matrices
                pl.BlockSpec((C, nb * LANE), lambda i: (0, 0)),      # fused K=Cin weights
                pl.BlockSpec((5, LANE, LANE), lambda i: (0, 0, 0)),  # conv_1x1_3
                pl.BlockSpec((LANE, LANE), lambda i: (0, 0)),        # conv_1x1_4 (padded)
                pl.BlockSpec((13, 1, LANE), lambda i: (0, 0, 0)),    # affines
            ],
            out_specs=pl.BlockSpec((1, HW, LANE), lambda i: (i, 0, 0)),
        ),
        compiler_params=pltpu.CompilerParams(dimension_semantics=("parallel",)),
    )(x, P, wx, w3, w4p, aff)

    logits = out[:, :, :num_classes].reshape(N, H, W, num_classes)
    return jnp.transpose(logits, (0, 3, 1, 2))                      # NCHW


# ----------------------------------------------------------------------------
# Parameter init (deterministic, PyTorch-like shapes)
# ----------------------------------------------------------------------------
def init_conv(key, cout, cin, k):
    kw, kb = jax.random.split(key)
    bound = 1.0 / ((cin * k * k) ** 0.5)
    w = jax.random.uniform(kw, (cout, cin, k, k), jnp.float32, -bound, bound)
    b = jax.random.uniform(kb, (cout,), jnp.float32, -bound, bound)
    return w, b


def init_bn(key, c):
    k1, k2, k3, k4 = jax.random.split(key, 4)
    gamma = 1.0 + 0.1 * jax.random.normal(k1, (c,), jnp.float32)
    beta = 0.1 * jax.random.normal(k2, (c,), jnp.float32)
    mean = 0.1 * jax.random.normal(k3, (c,), jnp.float32)
    var = 1.0 + 0.1 * jax.random.uniform(k4, (c,), jnp.float32)
    return gamma, beta, mean, var


def init_params(key, num_classes):
    ks = jax.random.split(key, 13)
    return {
        "conv_1x1_1": init_conv(ks[0], 128, 256, 1),
        "bn_conv_1x1_1": init_bn(ks[1], 128),
        "conv_3x3_1": init_conv(ks[2], 128, 256, 3),
        "bn_conv_3x3_1": init_bn(ks[3], 128),
        "conv_3x3_2": init_conv(ks[4], 128, 256, 3),
        "bn_conv_3x3_2": init_bn(ks[5], 128),
        "conv_3x3_3": init_conv(ks[6], 128, 256, 3),
        "bn_conv_3x3_3": init_bn(ks[7], 128),
        "conv_1x1_2": init_conv(ks[8], 128, 256, 1),
        "bn_conv_1x1_2": init_bn(ks[9], 128),
        "conv_1x1_3": init_conv(ks[10], 128, 640, 1),
        "bn_conv_1x1_3": init_bn(ks[11], 128),
        "conv_1x1_4": init_conv(ks[12], num_classes, 128, 1),
    }


# ----------------------------------------------------------------------------
# Pure-JAX reference (mirrors the PyTorch forward, eval-mode BN)
# ----------------------------------------------------------------------------
def aspp_reference(x, p, num_classes):
    eps = 1e-5
    prec = jax.lax.Precision.HIGHEST

    def conv(x, w, b, pad=0, dil=1):
        y = jax.lax.conv_general_dilated(
            x, w, window_strides=(1, 1),
            padding=((pad, pad), (pad, pad)),
            rhs_dilation=(dil, dil),
            dimension_numbers=("NCHW", "OIHW", "NCHW"),
            precision=prec)
        return y + b[None, :, None, None]

    def bn(y, params):
        g, bt, m, v = params
        return (g[None, :, None, None] * (y - m[None, :, None, None])
                / jnp.sqrt(v[None, :, None, None] + eps) + bt[None, :, None, None])

    relu = jax.nn.relu
    N, _, H, W = x.shape
    w, b = p["conv_1x1_1"]; o1 = relu(bn(conv(x, w, b), p["bn_conv_1x1_1"]))
    w, b = p["conv_3x3_1"]; o2 = relu(bn(conv(x, w, b, 6, 6), p["bn_conv_3x3_1"]))
    w, b = p["conv_3x3_2"]; o3 = relu(bn(conv(x, w, b, 12, 12), p["bn_conv_3x3_2"]))
    w, b = p["conv_3x3_3"]; o4 = relu(bn(conv(x, w, b, 18, 18), p["bn_conv_3x3_3"]))
    img = jnp.mean(x, axis=(2, 3), keepdims=True)
    w, b = p["conv_1x1_2"]; img = relu(bn(conv(img, w, b), p["bn_conv_1x1_2"]))
    img = jnp.broadcast_to(img, (N, 128, H, W))  # bilinear align_corners from 1x1
    cat = jnp.concatenate([o1, o2, o3, o4, img], axis=1)
    w, b = p["conv_1x1_3"]; out = relu(bn(conv(cat, w, b), p["bn_conv_1x1_3"]))
    w, b = p["conv_1x1_4"]; out = conv(out, w, b)
    return out


# ----------------------------------------------------------------------------
if __name__ == "__main__":
    num_classes = 21
    N, C, H, W = 2, 256, 8, 8  # Cin=256 is fixed by the module definition

    key = jax.random.PRNGKey(0)
    kx, kp = jax.random.split(key)
    x = jax.random.normal(kx, (N, C, H, W), jnp.float32)
    params = init_params(kp, num_classes)

    fwd = jax.jit(aspp_pallas, static_argnums=2)
    out = jax.block_until_ready(fwd(x, params, num_classes))
    assert out.shape == (N, num_classes, H, W), out.shape

    ref = aspp_reference(x, params, num_classes)
    err = float(jnp.max(jnp.abs(out - ref)))
    assert err < 5e-2, f"max abs err {err}"

    print("KERNEL_OK")
</pallas_src>

<mosaic_0001>
module attributes {stable_mosaic.version = 11 : i64} {
  func.func @_aspp_fused_kernel(%arg0: i32, %arg1: memref<1x64x256xbf16, #tpu.memory_space<vmem>>, %arg2: memref<8x64x64xf32, #tpu.memory_space<vmem>>, %arg3: memref<256x1664xbf16, #tpu.memory_space<vmem>>, %arg4: memref<5x128x128xbf16, #tpu.memory_space<vmem>>, %arg5: memref<128x128xbf16, #tpu.memory_space<vmem>>, %arg6: memref<13x1x128xf32, #tpu.memory_space<vmem>>, %arg7: memref<1x64x128xf32, #tpu.memory_space<vmem>>) attributes {dimension_semantics = [#tpu.dimension_semantics<parallel>], iteration_bounds = array<i64: 2>, scalar_prefetch = 0 : i64, scratch_operands = 0 : i64, tpu.core_type = #tpu.core_type<tc>, window_params = [{transform_indices = @transform_0, window_bounds = array<i64: 1, 64, 256>}, {pipeline_mode = #tpu.pipeline_mode<synchronous>, transform_indices = @transform_1, window_bounds = array<i64: 8, 64, 64>}, {pipeline_mode = #tpu.pipeline_mode<synchronous>, transform_indices = @transform_2, window_bounds = array<i64: 256, 1664>}, {pipeline_mode = #tpu.pipeline_mode<synchronous>, transform_indices = @transform_3, window_bounds = array<i64: 5, 128, 128>}, {pipeline_mode = #tpu.pipeline_mode<synchronous>, transform_indices = @transform_4, window_bounds = array<i64: 128, 128>}, {pipeline_mode = #tpu.pipeline_mode<synchronous>, transform_indices = @transform_5, window_bounds = array<i64: 13, 1, 128>}, {transform_indices = @transform_6, window_bounds = array<i64: 1, 64, 128>}]} {
    %c0 = arith.constant 0 : index
    %c0_0 = arith.constant 0 : index
    %c0_1 = arith.constant 0 : index
    %0 = vector.load %arg1[%c0, %c0_0, %c0_1] : memref<1x64x256xbf16, #tpu.memory_space<vmem>>, vector<1x64x256xbf16>
    %1 = vector.shape_cast %0 : vector<1x64x256xbf16> to vector<64x256xbf16>
    %c0_2 = arith.constant 0 : index
    %c0_3 = arith.constant 0 : index
    %2 = vector.load %arg3[%c0_2, %c0_3] : memref<256x1664xbf16, #tpu.memory_space<vmem>>, vector<256x1664xbf16>
    %cst = arith.constant dense<0.000000e+00> : vector<64x1664xf32>
    %3 = tpu.matmul %1, %2, %cst {dimension_numbers = #tpu.dot_dimension_numbers<[1], [0], [0], [1], [0, 0, 1, 1], [], []>} : vector<64x256xbf16>, vector<256x1664xbf16>, vector<64x1664xf32> -> vector<64x1664xf32>
    %4 = vector.extract_strided_slice %3 {offsets = [0, 0], sizes = [64, 128], strides = [1, 1]} : vector<64x1664xf32> to vector<64x128xf32>
    %c0_4 = arith.constant 0 : index
    %c0_5 = arith.constant 0 : index
    %c0_6 = arith.constant 0 : index
    %5 = vector.load %arg6[%c0_4, %c0_5, %c0_6] : memref<13x1x128xf32, #tpu.memory_space<vmem>>, vector<1x1x128xf32>
    %6 = vector.shape_cast %5 : vector<1x1x128xf32> to vector<1x128xf32>
    %7 = vector.broadcast %6 : vector<1x128xf32> to vector<64x128xf32>
    %8 = arith.mulf %4, %7 : vector<64x128xf32>
    %c1 = arith.constant 1 : index
    %c0_7 = arith.constant 0 : index
    %c0_8 = arith.constant 0 : index
    %9 = vector.load %arg6[%c1, %c0_7, %c0_8] : memref<13x1x128xf32, #tpu.memory_space<vmem>>, vector<1x1x128xf32>
    %10 = vector.shape_cast %9 : vector<1x1x128xf32> to vector<1x128xf32>
    %11 = vector.broadcast %10 : vector<1x128xf32> to vector<64x128xf32>
    %12 = arith.addf %8, %11 : vector<64x128xf32>
    %cst_9 = arith.constant 0.000000e+00 : f32
    %13 = vector.broadcast %cst_9 : f32 to vector<64x128xf32>
    %14 = arith.maximumf %12, %13 : vector<64x128xf32>
    %cst_10 = arith.constant 0.000000e+00 : f32
    %15 = vector.broadcast %cst_10 : f32 to vector<64x128xf32>
    %16 = vector.extract_strided_slice %3 {offsets = [0, 128], sizes = [64, 128], strides = [1, 1]} : vector<64x1664xf32> to vector<64x128xf32>
    %c0_11 = arith.constant 0 : index
    %c0_12 = arith.constant 0 : index
    %c0_13 = arith.constant 0 : index
    %17 = vector.load %arg2[%c0_11, %c0_12, %c0_13] : memref<8x64x64xf32, #tpu.memory_space<vmem>>, vector<1x64x64xf32>
    %18 = vector.shape_cast %17 : vector<1x64x64xf32> to vector<64x64xf32>
    %cst_14 = arith.constant dense<0.000000e+00> : vector<64x128xf32>
    %19 = tpu.matmul %18, %16, %cst_14 {dimension_numbers = #tpu.dot_dimension_numbers<[1], [0], [0], [1], [0, 0, 1, 1], [], []>} : vector<64x64xf32>, vector<64x128xf32>, vector<64x128xf32> -> vector<64x128xf32>
    %20 = arith.addf %15, %19 : vector<64x128xf32>
    %21 = vector.extract_strided_slice %3 {offsets = [0, 256], sizes = [64, 128], strides = [1, 1]} : vector<64x1664xf32> to vector<64x128xf32>
    %c1_15 = arith.constant 1 : index
    %c0_16 = arith.constant 0 : index
    %c0_17 = arith.constant 0 : index
    %22 = vector.load %arg2[%c1_15, %c0_16, %c0_17] : memref<8x64x64xf32, #tpu.memory_space<vmem>>, vector<1x64x64xf32>
    %23 = vector.shape_cast %22 : vector<1x64x64xf32> to vector<64x64xf32>
    %cst_18 = arith.constant dense<0.000000e+00> : vector<64x128xf32>
    %24 = tpu.matmul %23, %21, %cst_18 {dimension_numbers = #tpu.dot_dimension_numbers<[1], [0], [0], [1], [0, 0, 1, 1], [], []>} : vector<64x64xf32>, vector<64x128xf32>, vector<64x128xf32> -> vector<64x128xf32>
    %25 = arith.addf %20, %24 : vector<64x128xf32>
    %26 = vector.extract_strided_slice %3 {offsets = [0, 384], sizes = [64, 128], strides = [1, 1]} : vector<64x1664xf32> to vector<64x128xf32>
    %c2 = arith.constant 2 : index
    %c0_19 = arith.constant 0 : index
    %c0_20 = arith.constant 0 : index
    %27 = vector.load %arg2[%c2, %c0_19, %c0_20] : memref<8x64x64xf32, #tpu.memory_space<vmem>>, vector<1x64x64xf32>
    %28 = vector.shape_cast %27 : vector<1x64x64xf32> to vector<64x64xf32>
    %cst_21 = arith.constant dense<0.000000e+00> : vector<64x128xf32>
    %29 = tpu.matmul %28, %26, %cst_21 {dimension_numbers = #tpu.dot_dimension_numbers<[1], [0], [0], [1], [0, 0, 1, 1], [], []>} : vector<64x64xf32>, vector<64x128xf32>, vector<64x128xf32> -> vector<64x128xf32>
    %30 = arith.addf %25, %29 : vector<64x128xf32>
    %31 = vector.extract_strided_slice %3 {offsets = [0, 512], sizes = [64, 128], strides = [1, 1]} : vector<64x1664xf32> to vector<64x128xf32>
    %c3 = arith.constant 3 : index
    %c0_22 = arith.constant 0 : index
    %c0_23 = arith.constant 0 : index
    %32 = vector.load %arg2[%c3, %c0_22, %c0_23] : memref<8x64x64xf32, #tpu.memory_space<vmem>>, vector<1x64x64xf32>
    %33 = vector.shape_cast %32 : vector<1x64x64xf32> to vector<64x64xf32>
    %cst_24 = arith.constant dense<0.000000e+00> : vector<64x128xf32>
    %34 = tpu.matmul %33, %31, %cst_24 {dimension_numbers = #tpu.dot_dimension_numbers<[1], [0], [0], [1], [0, 0, 1, 1], [], []>} : vector<64x64xf32>, vector<64x128xf32>, vector<64x128xf32> -> vector<64x128xf32>
    %35 = arith.addf %30, %34 : vector<64x128xf32>
    %36 = vector.extract_strided_slice %3 {offsets = [0, 640], sizes = [64, 128], strides = [1, 1]} : vector<64x1664xf32> to vector<64x128xf32>
    %37 = arith.addf %35, %36 : vector<64x128xf32>
    %38 = vector.extract_strided_slice %3 {offsets = [0, 768], sizes = [64, 128], strides = [1, 1]} : vector<64x1664xf32> to vector<64x128xf32>
    %c4 = arith.constant 4 : index
    %c0_25 = arith.constant 0 : index
    %c0_26 = arith.constant 0 : index
    %39 = vector.load %arg2[%c4, %c0_25, %c0_26] : memref<8x64x64xf32, #tpu.memory_space<vmem>>, vector<1x64x64xf32>
    %40 = vector.shape_cast %39 : vector<1x64x64xf32> to vector<64x64xf32>
    %cst_27 = arith.constant dense<0.000000e+00> : vector<64x128xf32>
    %41 = tpu.matmul %40, %38, %cst_27 {dimension_numbers = #tpu.dot_dimension_numbers<[1], [0], [0], [1], [0, 0, 1, 1], [], []>} : vector<64x64xf32>, vector<64x128xf32>, vector<64x128xf32> -> vector<64x128xf32>
    %42 = arith.addf %37, %41 : vector<64x128xf32>
    %43 = vector.extract_strided_slice %3 {offsets = [0, 896], sizes = [64, 128], strides = [1, 1]} : vector<64x1664xf32> to vector<64x128xf32>
    %c5 = arith.constant 5 : index
    %c0_28 = arith.constant 0 : index
    %c0_29 = arith.constant 0 : index
    %44 = vector.load %arg2[%c5, %c0_28, %c0_29] : memref<8x64x64xf32, #tpu.memory_space<vmem>>, vector<1x64x64xf32>
    %45 = vector.shape_cast %44 : vector<1x64x64xf32> to vector<64x64xf32>
    %cst_30 = arith.constant dense<0.000000e+00> : vector<64x128xf32>
    %46 = tpu.matmul %45, %43, %cst_30 {dimension_numbers = #tpu.dot_dimension_numbers<[1], [0], [0], [1], [0, 0, 1, 1], [], []>} : vector<64x64xf32>, vector<64x128xf32>, vector<64x128xf32> -> vector<64x128xf32>
    %47 = arith.addf %42, %46 : vector<64x128xf32>
    %48 = vector.extract_strided_slice %3 {offsets = [0, 1024], sizes = [64, 128], strides = [1, 1]} : vector<64x1664xf32> to vector<64x128xf32>
    %c6 = arith.constant 6 : index
    %c0_31 = arith.constant 0 : index
    %c0_32 = arith.constant 0 : index
    %49 = vector.load %arg2[%c6, %c0_31, %c0_32] : memref<8x64x64xf32, #tpu.memory_space<vmem>>, vector<1x64x64xf32>
    %50 = vector.shape_cast %49 : vector<1x64x64xf32> to vector<64x64xf32>
    %cst_33 = arith.constant dense<0.000000e+00> : vector<64x128xf32>
    %51 = tpu.matmul %50, %48, %cst_33 {dimension_numbers = #tpu.dot_dimension_numbers<[1], [0], [0], [1], [0, 0, 1, 1], [], []>} : vector<64x64xf32>, vector<64x128xf32>, vector<64x128xf32> -> vector<64x128xf32>
    %52 = arith.addf %47, %51 : vector<64x128xf32>
    %53 = vector.extract_strided_slice %3 {offsets = [0, 1152], sizes = [64, 128], strides = [1, 1]} : vector<64x1664xf32> to vector<64x128xf32>
    %c7 = arith.constant 7 : index
    %c0_34 = arith.constant 0 : index
    %c0_35 = arith.constant 0 : index
    %54 = vector.load %arg2[%c7, %c0_34, %c0_35] : memref<8x64x64xf32, #tpu.memory_space<vmem>>, vector<1x64x64xf32>
    %55 = vector.shape_cast %54 : vector<1x64x64xf32> to vector<64x64xf32>
    %cst_36 = arith.constant dense<0.000000e+00> : vector<64x128xf32>
    %56 = tpu.matmul %55, %53, %cst_36 {dimension_numbers = #tpu.dot_dimension_numbers<[1], [0], [0], [1], [0, 0, 1, 1], [], []>} : vector<64x64xf32>, vector<64x128xf32>, vector<64x128xf32> -> vector<64x128xf32>
    %57 = arith.addf %52, %56 : vector<64x128xf32>
    %c2_37 = arith.constant 2 : index
    %c0_38 = arith.constant 0 : index
    %c0_39 = arith.constant 0 : index
    %58 = vector.load %arg6[%c2_37, %c0_38, %c0_39] : memref<13x1x128xf32, #tpu.memory_space<vmem>>, vector<1x1x128xf32>
    %59 = vector.shape_cast %58 : vector<1x1x128xf32> to vector<1x128xf32>
    %60 = vector.broadcast %59 : vector<1x128xf32> to vector<64x128xf32>
    %61 = arith.mulf %57, %60 : vector<64x128xf32>
    %c3_40 = arith.constant 3 : index
    %c0_41 = arith.constant 0 : index
    %c0_42 = arith.constant 0 : index
    %62 = vector.load %arg6[%c3_40, %c0_41, %c0_42] : memref<13x1x128xf32, #tpu.memory_space<vmem>>, vector<1x1x128xf32>
    %63 = vector.shape_cast %62 : vector<1x1x128xf32> to vector<1x128xf32>
    %64 = vector.broadcast %63 : vector<1x128xf32> to vector<64x128xf32>
    %65 = arith.addf %61, %64 : vector<64x128xf32>
    %cst_43 = arith.constant 0.000000e+00 : f32
    %66 = vector.broadcast %cst_43 : f32 to vector<64x128xf32>
    %67 = arith.maximumf %65, %66 : vector<64x128xf32>
    %cst_44 = arith.constant 0.000000e+00 : f32
    %68 = vector.broadcast %cst_44 : f32 to vector<64x128xf32>
    %69 = vector.extract_strided_slice %3 {offsets = [0, 1280], sizes = [64, 128], strides = [1, 1]} : vector<64x1664xf32> to vector<64x128xf32>
    %70 = arith.addf %68, %69 : vector<64x128xf32>
    %c4_45 = arith.constant 4 : index
    %c0_46 = arith.constant 0 : index
    %c0_47 = arith.constant 0 : index
    %71 = vector.load %arg6[%c4_45, %c0_46, %c0_47] : memref<13x1x128xf32, #tpu.memory_space<vmem>>, vector<1x1x128xf32>
    %72 = vector.shape_cast %71 : vector<1x1x128xf32> to vector<1x128xf32>
    %73 = vector.broadcast %72 : vector<1x128xf32> to vector<64x128xf32>
    %74 = arith.mulf %70, %73 : vector<64x128xf32>
    %c5_48 = arith.constant 5 : index
    %c0_49 = arith.constant 0 : index
    %c0_50 = arith.constant 0 : index
    %75 = vector.load %arg6[%c5_48, %c0_49, %c0_50] : memref<13x1x128xf32, #tpu.memory_space<vmem>>, vector<1x1x128xf32>
    %76 = vector.shape_cast %75 : vector<1x1x128xf32> to vector<1x128xf32>
    %77 = vector.broadcast %76 : vector<1x128xf32> to vector<64x128xf32>
    %78 = arith.addf %74, %77 : vector<64x128xf32>
    %cst_51 = arith.constant 0.000000e+00 : f32
    %79 = vector.broadcast %cst_51 : f32 to vector<64x128xf32>
    %80 = arith.maximumf %78, %79 : vector<64x128xf32>
    %cst_52 = arith.constant 0.000000e+00 : f32
    %81 = vector.broadcast %cst_52 : f32 to vector<64x128xf32>
    %82 = vector.extract_strided_slice %3 {offsets = [0, 1408], sizes = [64, 128], strides = [1, 1]} : vector<64x1664xf32> to vector<64x128xf32>
    %83 = arith.addf %81, %82 : vector<64x128xf32>
    %c6_53 = arith.constant 6 : index
    %c0_54 = arith.constant 0 : index
    %c0_55 = arith.constant 0 : index
    %84 = vector.load %arg6[%c6_53, %c0_54, %c0_55] : memref<13x1x128xf32, #tpu.memory_space<vmem>>, vector<1x1x128xf32>
    %85 = vector.shape_cast %84 : vector<1x1x128xf32> to vector<1x128xf32>
    %86 = vector.broadcast %85 : vector<1x128xf32> to vector<64x128xf32>
    %87 = arith.mulf %83, %86 : vector<64x128xf32>
    %c7_56 = arith.constant 7 : index
    %c0_57 = arith.constant 0 : index
    %c0_58 = arith.constant 0 : index
    %88 = vector.load %arg6[%c7_56, %c0_57, %c0_58] : memref<13x1x128xf32, #tpu.memory_space<vmem>>, vector<1x1x128xf32>
    %89 = vector.shape_cast %88 : vector<1x1x128xf32> to vector<1x128xf32>
    %90 = vector.broadcast %89 : vector<1x128xf32> to vector<64x128xf32>
    %91 = arith.addf %87, %90 : vector<64x128xf32>
    %cst_59 = arith.constant 0.000000e+00 : f32
    %92 = vector.broadcast %cst_59 : f32 to vector<64x128xf32>
    %93 = arith.maximumf %91, %92 : vector<64x128xf32>
    %94 = vector.extract_strided_slice %3 {offsets = [0, 1536], sizes = [64, 128], strides = [1, 1]} : vector<64x1664xf32> to vector<64x128xf32>
    %cst_60 = arith.constant dense<0.000000e+00> : vector<128xf32>
    %95 = vector.multi_reduction <add>, %94, %cst_60 [0] : vector<64x128xf32> to vector<128xf32>
    %96 = vector.shape_cast %95 : vector<128xf32> to vector<1x128xf32>
    %cst_61 = arith.constant 6.400000e+01 : f32
    %97 = vector.broadcast %cst_61 : f32 to vector<1x128xf32>
    %98 = arith.divf %96, %97 : vector<1x128xf32>
    %c8 = arith.constant 8 : index
    %c0_62 = arith.constant 0 : index
    %c0_63 = arith.constant 0 : index
    %99 = vector.load %arg6[%c8, %c0_62, %c0_63] : memref<13x1x128xf32, #tpu.memory_space<vmem>>, vector<1x1x128xf32>
    %100 = vector.shape_cast %99 : vector<1x1x128xf32> to vector<1x128xf32>
    %101 = arith.mulf %98, %100 : vector<1x128xf32>
    %c9 = arith.constant 9 : index
    %c0_64 = arith.constant 0 : index
    %c0_65 = arith.constant 0 : index
    %102 = vector.load %arg6[%c9, %c0_64, %c0_65] : memref<13x1x128xf32, #tpu.memory_space<vmem>>, vector<1x1x128xf32>
    %103 = vector.shape_cast %102 : vector<1x1x128xf32> to vector<1x128xf32>
    %104 = arith.addf %101, %103 : vector<1x128xf32>
    %cst_66 = arith.constant 0.000000e+00 : f32
    %105 = vector.broadcast %cst_66 : f32 to vector<1x128xf32>
    %106 = arith.maximumf %104, %105 : vector<1x128xf32>
    %107 = vector.shape_cast %106 : vector<1x128xf32> to vector<1x128xf32>
    %108 = vector.broadcast %107 : vector<1x128xf32> to vector<64x128xf32>
    %cst_67 = arith.constant 0.000000e+00 : f32
    %109 = vector.broadcast %cst_67 : f32 to vector<64x128xf32>
    %110 = arith.truncf %14 : vector<64x128xf32> to vector<64x128xbf16>
    %c0_68 = arith.constant 0 : index
    %c0_69 = arith.constant 0 : index
    %c0_70 = arith.constant 0 : index
    %111 = vector.load %arg4[%c0_68, %c0_69, %c0_70] : memref<5x128x128xbf16, #tpu.memory_space<vmem>>, vector<1x128x128xbf16>
    %112 = vector.shape_cast %111 : vector<1x128x128xbf16> to vector<128x128xbf16>
    %cst_71 = arith.constant dense<0.000000e+00> : vector<64x128xf32>
    %113 = tpu.matmul %110, %112, %cst_71 {dimension_numbers = #tpu.dot_dimension_numbers<[1], [0], [0], [1], [0, 0, 1, 1], [], []>} : vector<64x128xbf16>, vector<128x128xbf16>, vector<64x128xf32> -> vector<64x128xf32>
    %114 = arith.addf %109, %113 : vector<64x128xf32>
    %115 = arith.truncf %67 : vector<64x128xf32> to vector<64x128xbf16>
    %c1_72 = arith.constant 1 : index
    %c0_73 = arith.constant 0 : index
    %c0_74 = arith.constant 0 : index
    %116 = vector.load %arg4[%c1_72, %c0_73, %c0_74] : memref<5x128x128xbf16, #tpu.memory_space<vmem>>, vector<1x128x128xbf16>
    %117 = vector.shape_cast %116 : vector<1x128x128xbf16> to vector<128x128xbf16>
    %cst_75 = arith.constant dense<0.000000e+00> : vector<64x128xf32>
    %118 = tpu.matmul %115, %117, %cst_75 {dimension_numbers = #tpu.dot_dimension_numbers<[1], [0], [0], [1], [0, 0, 1, 1], [], []>} : vector<64x128xbf16>, vector<128x128xbf16>, vector<64x128xf32> -> vector<64x128xf32>
    %119 = arith.addf %114, %118 : vector<64x128xf32>
    %120 = arith.truncf %80 : vector<64x128xf32> to vector<64x128xbf16>
    %c2_76 = arith.constant 2 : index
    %c0_77 = arith.constant 0 : index
    %c0_78 = arith.constant 0 : index
    %121 = vector.load %arg4[%c2_76, %c0_77, %c0_78] : memref<5x128x128xbf16, #tpu.memory_space<vmem>>, vector<1x128x128xbf16>
    %122 = vector.shape_cast %121 : vector<1x128x128xbf16> to vector<128x128xbf16>
    %cst_79 = arith.constant dense<0.000000e+00> : vector<64x128xf32>
    %123 = tpu.matmul %120, %122, %cst_79 {dimension_numbers = #tpu.dot_dimension_numbers<[1], [0], [0], [1], [0, 0, 1, 1], [], []>} : vector<64x128xbf16>, vector<128x128xbf16>, vector<64x128xf32> -> vector<64x128xf32>
    %124 = arith.addf %119, %123 : vector<64x128xf32>
    %125 = arith.truncf %93 : vector<64x128xf32> to vector<64x128xbf16>
    %c3_80 = arith.constant 3 : index
    %c0_81 = arith.constant 0 : index
    %c0_82 = arith.constant 0 : index
    %126 = vector.load %arg4[%c3_80, %c0_81, %c0_82] : memref<5x128x128xbf16, #tpu.memory_space<vmem>>, vector<1x128x128xbf16>
    %127 = vector.shape_cast %126 : vector<1x128x128xbf16> to vector<128x128xbf16>
    %cst_83 = arith.constant dense<0.000000e+00> : vector<64x128xf32>
    %128 = tpu.matmul %125, %127, %cst_83 {dimension_numbers = #tpu.dot_dimension_numbers<[1], [0], [0], [1], [0, 0, 1, 1], [], []>} : vector<64x128xbf16>, vector<128x128xbf16>, vector<64x128xf32> -> vector<64x128xf32>
    %129 = arith.addf %124, %128 : vector<64x128xf32>
    %130 = arith.truncf %108 : vector<64x128xf32> to vector<64x128xbf16>
    %c4_84 = arith.constant 4 : index
    %c0_85 = arith.constant 0 : index
    %c0_86 = arith.constant 0 : index
    %131 = vector.load %arg4[%c4_84, %c0_85, %c0_86] : memref<5x128x128xbf16, #tpu.memory_space<vmem>>, vector<1x128x128xbf16>
    %132 = vector.shape_cast %131 : vector<1x128x128xbf16> to vector<128x128xbf16>
    %cst_87 = arith.constant dense<0.000000e+00> : vector<64x128xf32>
    %133 = tpu.matmul %130, %132, %cst_87 {dimension_numbers = #tpu.dot_dimension_numbers<[1], [0], [0], [1], [0, 0, 1, 1], [], []>} : vector<64x128xbf16>, vector<128x128xbf16>, vector<64x128xf32> -> vector<64x128xf32>
    %134 = arith.addf %129, %133 : vector<64x128xf32>
    %c10 = arith.constant 10 : index
    %c0_88 = arith.constant 0 : index
    %c0_89 = arith.constant 0 : index
    %135 = vector.load %arg6[%c10, %c0_88, %c0_89] : memref<13x1x128xf32, #tpu.memory_space<vmem>>, vector<1x1x128xf32>
    %136 = vector.shape_cast %135 : vector<1x1x128xf32> to vector<1x128xf32>
    %137 = vector.broadcast %136 : vector<1x128xf32> to vector<64x128xf32>
    %138 = arith.mulf %134, %137 : vector<64x128xf32>
    %c11 = arith.constant 11 : index
    %c0_90 = arith.constant 0 : index
    %c0_91 = arith.constant 0 : index
    %139 = vector.load %arg6[%c11, %c0_90, %c0_91] : memref<13x1x128xf32, #tpu.memory_space<vmem>>, vector<1x1x128xf32>
    %140 = vector.shape_cast %139 : vector<1x1x128xf32> to vector<1x128xf32>
    %141 = vector.broadcast %140 : vector<1x128xf32> to vector<64x128xf32>
    %142 = arith.addf %138, %141 : vector<64x128xf32>
    %cst_92 = arith.constant 0.000000e+00 : f32
    %143 = vector.broadcast %cst_92 : f32 to vector<64x128xf32>
    %144 = arith.maximumf %142, %143 : vector<64x128xf32>
    %145 = arith.truncf %144 : vector<64x128xf32> to vector<64x128xbf16>
    %c0_93 = arith.constant 0 : index
    %c0_94 = arith.constant 0 : index
    %146 = vector.load %arg5[%c0_93, %c0_94] : memref<128x128xbf16, #tpu.memory_space<vmem>>, vector<128x128xbf16>
    %cst_95 = arith.constant dense<0.000000e+00> : vector<64x128xf32>
    %147 = tpu.matmul %145, %146, %cst_95 {dimension_numbers = #tpu.dot_dimension_numbers<[1], [0], [0], [1], [0, 0, 1, 1], [], []>} : vector<64x128xbf16>, vector<128x128xbf16>, vector<64x128xf32> -> vector<64x128xf32>
    %c12 = arith.constant 12 : index
    %c0_96 = arith.constant 0 : index
    %c0_97 = arith.constant 0 : index
    %148 = vector.load %arg6[%c12, %c0_96, %c0_97] : memref<13x1x128xf32, #tpu.memory_space<vmem>>, vector<1x1x128xf32>
    %149 = vector.shape_cast %148 : vector<1x1x128xf32> to vector<1x128xf32>
    %150 = vector.broadcast %149 : vector<1x128xf32> to vector<64x128xf32>
    %151 = arith.addf %147, %150 : vector<64x128xf32>
    %c0_98 = arith.constant 0 : index
    %c0_99 = arith.constant 0 : index
    %c0_100 = arith.constant 0 : index
    %152 = vector.load %arg7[%c0_98, %c0_99, %c0_100] : memref<1x64x128xf32, #tpu.memory_space<vmem>>, vector<1x64x128xf32>
    %153 = vector.shape_cast %152 : vector<1x64x128xf32> to vector<64x128xf32>
    %154 = vector.shape_cast %151 : vector<64x128xf32> to vector<1x64x128xf32>
    tpu.vector_store %arg7[%c0_98, %c0_99, %c0_100], %154 {strides = array<i32>} : memref<1x64x128xf32, #tpu.memory_space<vmem>>, vector<1x64x128xf32>,
    return
  }
  func.func @transform_0(%arg0: i32) -> (i32, i32, i32) {
    %c0_i32 = arith.constant 0 : i32
    %c0_i32_0 = arith.constant 0 : i32
    %c0_i32_1 = arith.constant 0 : i32
    return %arg0, %c0_i32, %c0_i32_0 : i32, i32, i32
  }
  func.func @transform_1(%arg0: i32) -> (i32, i32, i32) {
    %c0_i32 = arith.constant 0 : i32
    %c0_i32_0 = arith.constant 0 : i32
    %c0_i32_1 = arith.constant 0 : i32
    %c0_i32_2 = arith.constant 0 : i32
    return %c0_i32, %c0_i32_0, %c0_i32_1 : i32, i32, i32
  }
  func.func @transform_2(%arg0: i32) -> (i32, i32) {
    %c0_i32 = arith.constant 0 : i32
    %c0_i32_0 = arith.constant 0 : i32
    %c0_i32_1 = arith.constant 0 : i32
    return %c0_i32, %c0_i32_0 : i32, i32
  }
  func.func @transform_3(%arg0: i32) -> (i32, i32, i32) {
    %c0_i32 = arith.constant 0 : i32
    %c0_i32_0 = arith.constant 0 : i32
    %c0_i32_1 = arith.constant 0 : i32
    %c0_i32_2 = arith.constant 0 : i32
    return %c0_i32, %c0_i32_0, %c0_i32_1 : i32, i32, i32
  }
  func.func @transform_4(%arg0: i32) -> (i32, i32) {
    %c0_i32 = arith.constant 0 : i32
    %c0_i32_0 = arith.constant 0 : i32
    %c0_i32_1 = arith.constant 0 : i32
    return %c0_i32, %c0_i32_0 : i32, i32
  }
  func.func @transform_5(%arg0: i32) -> (i32, i32, i32) {
    %c0_i32 = arith.constant 0 : i32
    %c0_i32_0 = arith.constant 0 : i32
    %c0_i32_1 = arith.constant 0 : i32
    %c0_i32_2 = arith.constant 0 : i32
    return %c0_i32, %c0_i32_0, %c0_i32_1 : i32, i32, i32
  }
  func.func @transform_6(%arg0: i32) -> (i32, i32, i32) {
    %c0_i32 = arith.constant 0 : i32
    %c0_i32_0 = arith.constant 0 : i32
    %c0_i32_1 = arith.constant 0 : i32
    return %arg0, %c0_i32, %c0_i32_0 : i32, i32, i32
  }
}

</mosaic_0001>

<bundles_post_ra>
// kernel: aspp_pallas.1
= control target key start
LH: loop header
LB: loop body
LE: loop exit
PB: predicated region body
PF: predicated region fallthrough
CT: control target
= control target key end

     0   :  { %s6126_s21 = smov 0   ;;  %s7552_s0 = inlined_call_operand.vmem [shape: bf16[2,64,256], index: 0, kind: input, shape index: {}]   ;;  %s7553_s1 = inlined_call_operand.vmem [shape: f32[8,64,64], index: 1, kind: input, shape index: {}]   ;;  %s7554_s2 = inlined_call_operand.vmem [shape: bf16[256,1664], index: 2, kind: input, shape index: {}]   ;;  %s7555_s3 = inlined_call_operand.vmem [shape: bf16[5,128,128], index: 3, kind: input, shape index: {}]   ;;  %s7556_s4 = inlined_call_operand.vmem [shape: bf16[128,128], index: 4, kind: input, shape index: {}]   ;;  %s7557_s5 = inlined_call_operand.vmem [shape: f32[13,1,128], index: 5, kind: input, shape index: {}]   ;;  %s7558_s6 = inlined_call_operand.vmem [shape: f32[2,64,128], index: 6, kind: output, shape index: {}]  }
   0x1 LB: > { %s4379_s22 = sadd.s32 4294967295, %s6089_s21   ;;  %p4383_p0 = scmp.ge.s32.totalorder %s6089_s21, 1  ;;  %s6089_s21 = sphi %s6126_s21, %s16_s21  }
   0x2   : > { %p212_p1 = scmp.lt.s32.totalorder %s6089_s21, 3 }
   0x4   : > { %p213_p2 = pnand %p4383_p0, %p212_p1 }
   0x5   : > { %v5711_v0 = vld [vmem:[%s7554_s2 + $0x4] ss:$52 sps:$4 sm:$0xff] (!%p213_p2)   ;;  %v5713_v1 = vld [vmem:[%s7554_s2] ss:$52 sps:$4 sm:$0xff] (!%p213_p2)   ;;  %v5716_v3 = vld [vmem:[%s7554_s2 + $0x68] ss:$52 sps:$4 sm:$0xff] (!%p213_p2)  }
   0x6   : > { %216 = sbr.rel (%p213_p2) target bundleno = 1327 (0x52f), region = 44  ;;  %1581 = vmatprep.subr.bf16.mxu0 (!%p213_p2), %v5711_v0  ;;  %v5714_v2 = vld [vmem:[%s7554_s2 + $0x6c] ss:$52 sps:$4 sm:$0xff] (!%p213_p2)   ;;  %v5717_v4 = vld [vmem:[%s7554_s2 + $0xd4] ss:$52 sps:$4 sm:$0xff] (!%p213_p2)   ;;  %p242_p3 = scmp.lt.s32.totalorder (!%p213_p2), %s4379_s22, 1 }
   0x7   : > { %1582 = vmatpush1.bf16.msra.mxu0 (!%p213_p2), %v5713_v1  ;;  %v5719_v5 = vld [vmem:[%s7554_s2 + $0xd0] ss:$52 sps:$4 sm:$0xff] (!%p213_p2)   ;;  %v5722_v7 = vld [vmem:[%s7554_s2 + $0x138] ss:$52 sps:$4 sm:$0xff] (!%p213_p2)   ;;  %v5725_v9 = vld [vmem:[%s7554_s2 + $0x1a0] ss:$52 sps:$4 sm:$0xff] (!%p213_p2)  }
   0x8   : > { %1583 = vmatprep.subr.bf16.mxu0 (!%p213_p2), %v5714_v2  ;;  %v5720_v6 = vld [vmem:[%s7554_s2 + $0x13c] ss:$52 sps:$4 sm:$0xff] (!%p213_p2)   ;;  %v5723_v8 = vld [vmem:[%s7554_s2 + $0x1a4] ss:$52 sps:$4 sm:$0xff] (!%p213_p2)   ;;  %v5726_v10 = vld [vmem:[%s7554_s2 + $0x20c] ss:$52 sps:$4 sm:$0xff] (!%p213_p2)  }
   0x9   : > { %v5728_v11 = vld [vmem:[%s7554_s2 + $0x208] ss:$52 sps:$4 sm:$0xff] (!%p213_p2)   ;;  %v5731_v14 = vld [vmem:[%s7554_s2 + $0x270] ss:$52 sps:$4 sm:$0xff] (!%p213_p2)   ;;  %v5734_v16 = vld [vmem:[%s7554_s2 + $0x2d8] ss:$52 sps:$4 sm:$0xff] (!%p213_p2)  }
   0xa   : > { %v5729_v12 = vld [vmem:[%s7554_s2 + $0x274] ss:$52 sps:$4 sm:$0xff] (!%p213_p2)   ;;  %v5732_v15 = vld [vmem:[%s7554_s2 + $0x2dc] ss:$52 sps:$4 sm:$0xff] (!%p213_p2)   ;;  %v5735_v17 = vld [vmem:[%s7554_s2 + $0x344] ss:$52 sps:$4 sm:$0xff] (!%p213_p2)  }
   0xb   : > { %1584 = vmatpush1.bf16.msra.mxu0 (!%p213_p2), %v5716_v3  ;;  %v5737_v18 = vld [vmem:[%s7554_s2 + $0x340] ss:$52 sps:$4 sm:$0xff] (!%p213_p2)   ;;  %v5740_v20 = vld [vmem:[%s7554_s2 + $0x3a8] ss:$52 sps:$4 sm:$0xff] (!%p213_p2)   ;;  %v5743_v22 = vld [vmem:[%s7554_s2 + $0x410] ss:$52 sps:$4 sm:$0xff] (!%p213_p2)  }
   0xc   : > { %1585 = vmatprep.subr.bf16.mxu0 (!%p213_p2), %v5717_v4  ;;  %v5738_v19 = vld [vmem:[%s7554_s2 + $0x3ac] ss:$52 sps:$4 sm:$0xff] (!%p213_p2)   ;;  %v5741_v21 = vld [vmem:[%s7554_s2 + $0x414] ss:$52 sps:$4 sm:$0xff] (!%p213_p2)   ;;  %v5744_v23 = vld [vmem:[%s7554_s2 + $0x47c] ss:$52 sps:$4 sm:$0xff] (!%p213_p2)  }
   0xd   : > { %s7560_s22 = smov (!%p242_p3, %s4379_s22), 1  ;;  %v5746_v24 = vld [vmem:[%s7554_s2 + $0x478] ss:$52 sps:$4 sm:$0xff]   ;;  %v5749_v26 = vld [vmem:[%s7554_s2 + $0x4e0] ss:$52 sps:$4 sm:$0xff]   ;;  %vm2140_vm0 = vcmask 523264  }
   0xe   : > { %s4861_s23 = sshll.u32 %s7560_s22, 6  ;;  %v5747_v25 = vld [vmem:[%s7554_s2 + $0x4e4] ss:$52 sps:$4 sm:$0xff]   ;;  %v5750_v27 = vld [vmem:[%s7554_s2 + $0x54c] ss:$52 sps:$4 sm:$0xff]  }
   0xf   : > { %1586 = vmatpush1.bf16.msra.mxu0 %v5719_v5  ;;  %s6178_s28 = scalar_lea.vmem %s7552_s0, %s4861_s23  ;;  %v5822_v28 = vld [vmem:[%s7554_s2 + $0x1c] ss:$52 sps:$4 sm:$0xff]   ;;  %v5824_v29 = vld [vmem:[%s7554_s2 + $0x18] ss:$52 sps:$4 sm:$0xff]   ;;  %v5753_v31 = vld [vmem:[%s7554_s2 + $0x5b4] ss:$52 sps:$4 sm:$0xff]   ;;  %s251_s17 = scalar_lea.vmem %s7558_s6, %s4861_s23 }
  0x10   : > { %1587 = vmatprep.subr.bf16.mxu0 %v5720_v6  ;;  %v6184_v13 = vld [vmem:[%s6178_s28 + $0x4] ss:$8 sps:$4 sm:$0xff]   ;;  %v5752_v30 = vld [vmem:[%s7554_s2 + $0x548] ss:$52 sps:$4 sm:$0xff]   ;;  %1800 = vmatprep.subr.bf16.mxu1 %v5822_v28  ;;  %v5830_v33 = vld [vmem:[%s7554_s2 + $0x80] ss:$52 sps:$4 sm:$0xff]  }
  0x11   : > { %1613 = vmatprep.mubr.bf16.mxu0 %v6184_v13  ;;  %1832 = vmatprep.mubr.bf16.mxu1 %v6184_v13  ;;  %v5828_v32 = vld [vmem:[%s7554_s2 + $0x84] ss:$52 sps:$4 sm:$0xff]   ;;  %v5834_v35 = vld [vmem:[%s7554_s2 + $0xec] ss:$52 sps:$4 sm:$0xff]   ;;  %v5756_v36 = vld [vmem:[%s7554_s2 + $0x61c] ss:$52 sps:$4 sm:$0xff]  }
  0x12   : > { %1801 = vmatpush1.bf16.msra.mxu1 %v5824_v29  ;;  %v5755_v34 = vld [vmem:[%s7554_s2 + $0x5b0] ss:$52 sps:$4 sm:$0xff]   ;;  %v5836_v37 = vld [vmem:[%s7554_s2 + $0xe8] ss:$52 sps:$4 sm:$0xff]   ;;  %v5758_v39 = vld [vmem:[%s7554_s2 + $0x618] ss:$52 sps:$4 sm:$0xff]  }
  0x13   : > { %1588 = vmatpush1.bf16.msra.mxu0 %v5722_v7  ;;  %1802 = vmatprep.subr.bf16.mxu1 %v5828_v32  ;;  %v5840_v38 = vld [vmem:[%s7554_s2 + $0x154] ss:$52 sps:$4 sm:$0xff]   ;;  %v5764_v40 = vld [vmem:[%s7554_s2 + $0xc] ss:$52 sps:$4 sm:$0xff]   ;;  %v5842_v41 = vld [vmem:[%s7554_s2 + $0x150] ss:$52 sps:$4 sm:$0xff]  }
  0x14   : > { %1589 = vmatprep.subr.bf16.mxu0 %v5723_v8  ;;  %v6273_v42 = vld [vmem:[%s6178_s28] ss:$8 sps:$4 sm:$0xff]   ;;  %v5846_v43 = vld [vmem:[%s7554_s2 + $0x1bc] ss:$52 sps:$4 sm:$0xff]   ;;  %v5848_v47 = vld [vmem:[%s7554_s2 + $0x1b8] ss:$52 sps:$4 sm:$0xff]  }
  0x15   : > { %v5762_v44 = vld [vmem:[%s7554_s2 + $0x8] ss:$52 sps:$4 sm:$0xff]   ;;  %v5852_v48 = vld [vmem:[%s7554_s2 + $0x224] ss:$52 sps:$4 sm:$0xff]   ;;  %v5854_v51 = vld [vmem:[%s7554_s2 + $0x220] ss:$52 sps:$4 sm:$0xff]  }
  0x16   : > { %1803 = vmatpush1.bf16.msra.mxu1 %v5830_v33  ;;  %v6282_v45 = vld [vmem:[%s6178_s28 + $0x14] ss:$8 sps:$4 sm:$0xff]   ;;  %v5765_v49 = vld [vmem:[%s7554_s2 + $0x70] ss:$52 sps:$4 sm:$0xff]   ;;  %v5858_v53 = vld [vmem:[%s7554_s2 + $0x28c] ss:$52 sps:$4 sm:$0xff]  }
  0x17   : > { %1590 = vmatpush1.bf16.msra.mxu0 %v5725_v9  ;;  %1804 = vmatprep.subr.bf16.mxu1 %v5834_v35  ;;  %v5767_v46 = vld [vmem:[%s7554_s2 + $0x74] ss:$52 sps:$4 sm:$0xff]   ;;  %v5770_v50 = vld [vmem:[%s7554_s2 + $0xdc] ss:$52 sps:$4 sm:$0xff]   ;;  %v5768_v54 = vld [vmem:[%s7554_s2 + $0xd8] ss:$52 sps:$4 sm:$0xff]  }
  0x18   : > { %1591 = vmatprep.subr.bf16.mxu0 %v5726_v10  ;;  %v6305_v52 = vld [vmem:[%s6178_s28 + $0x10] ss:$8 sps:$4 sm:$0xff]   ;;  %v6314_v55 = vld [vmem:[%s6178_s28 + $0x24] ss:$8 sps:$4 sm:$0xff]   ;;  %v5860_v57 = vld [vmem:[%s7554_s2 + $0x288] ss:$52 sps:$4 sm:$0xff]  }
  0x19   : > { %v5773_v56 = vld [vmem:[%s7554_s2 + $0x144] ss:$52 sps:$4 sm:$0xff]   ;;  %v5864_v58 = vld [vmem:[%s7554_s2 + $0x2f4] ss:$52 sps:$4 sm:$0xff]   ;;  %v5776_v60 = vld [vmem:[%s7554_s2 + $0x1ac] ss:$52 sps:$4 sm:$0xff]  }
  0x1a   : > { %1805 = vmatpush1.bf16.msra.mxu1 %v5836_v37  ;;  %v5771_v59 = vld [vmem:[%s7554_s2 + $0x140] ss:$52 sps:$4 sm:$0xff]   ;;  %v5866_v61 = vld [vmem:[%s7554_s2 + $0x2f0] ss:$52 sps:$4 sm:$0xff]   ;;  %v5774_v0 = vld [vmem:[%s7554_s2 + $0x1a8] ss:$52 sps:$4 sm:$0xff]  }
  0x1b   : > { %1592 = vmatpush1.bf16.msra.mxu0 %v5728_v11  ;;  %1806 = vmatprep.subr.bf16.mxu1 %v5840_v38  ;;  %v6337_v62 = vld [vmem:[%s6178_s28 + $0x20] ss:$8 sps:$4 sm:$0xff]   ;;  %v5870_v63 = vld [vmem:[%s7554_s2 + $0x35c] ss:$52 sps:$4 sm:$0xff]   ;;  %v5872_v3 = vld [vmem:[%s7554_s2 + $0x358] ss:$52 sps:$4 sm:$0xff]  }
  0x1c   : > { %1593 = vmatprep.subr.bf16.mxu0 %v5729_v12  ;;  %v6346_v1 = vld [vmem:[%s6178_s28 + $0x34] ss:$8 sps:$4 sm:$0xff]   ;;  %v5876_v4 = vld [vmem:[%s7554_s2 + $0x3c4] ss:$52 sps:$4 sm:$0xff]   ;;  %v5882_v9 = vld [vmem:[%s7554_s2 + $0x42c] ss:$52 sps:$4 sm:$0xff]  }
  0x1d   : > { %v5779_v2 = vld [vmem:[%s7554_s2 + $0x214] ss:$52 sps:$4 sm:$0xff]   ;;  %v5777_v5 = vld [vmem:[%s7554_s2 + $0x210] ss:$52 sps:$4 sm:$0xff]   ;;  %v5780_v10 = vld [vmem:[%s7554_s2 + $0x278] ss:$52 sps:$4 sm:$0xff]  }
  0x1e   : > { %1807 = vmatpush1.bf16.msra.mxu1 %v5842_v41  ;;  %v5782_v6 = vld [vmem:[%s7554_s2 + $0x27c] ss:$52 sps:$4 sm:$0xff]   ;;  %v5878_v7 = vld [vmem:[%s7554_s2 + $0x3c0] ss:$52 sps:$4 sm:$0xff]   ;;  %v5785_v11 = vld [vmem:[%s7554_s2 + $0x2e4] ss:$52 sps:$4 sm:$0xff]  }
  0x1f   : > { %1594 = vmatpush1.bf16.msra.mxu0 %v5731_v14  ;;  %1808 = vmatprep.subr.bf16.mxu1 %v5846_v43  ;;  %v6369_v8 = vld [vmem:[%s6178_s28 + $0x30] ss:$8 sps:$4 sm:$0xff]   ;;  %v5884_v12 = vld [vmem:[%s7554_s2 + $0x428] ss:$52 sps:$4 sm:$0xff]   ;;  %v5806_v32 = vld [vmem:[%s7554_s2 + $0x4ec] ss:$52 sps:$4 sm:$0xff]  }
  0x20   : > { %1595 = vmatprep.subr.bf16.mxu0 %v5732_v15  ;;  %v5888_v14 = vld [vmem:[%s7554_s2 + $0x494] ss:$52 sps:$4 sm:$0xff]   ;;  %v5800_v28 = vld [vmem:[%s7554_s2 + $0x484] ss:$52 sps:$4 sm:$0xff]   ;;  %v5815_v37 = vld [vmem:[%s7554_s2 + $0x5bc] ss:$52 sps:$4 sm:$0xff]  }
  0x21   : > { %v5783_v15 = vld [vmem:[%s7554_s2 + $0x2e0] ss:$52 sps:$4 sm:$0xff]   ;;  %v5908_v29 = vld [vmem:[%s7554_s2 + $0x5c8] ss:$52 sps:$4 sm:$0xff]   ;;  %v5914_v33 = vld [vmem:[%s7554_s2 + $0x630] ss:$52 sps:$4 sm:$0xff]  }
  0x22   : > { %1809 = vmatpush1.bf16.msra.mxu1 %v5848_v47  ;;  %v5809_v35 = vld [vmem:[%s7554_s2 + $0x554] ss:$52 sps:$4 sm:$0xff]   ;;  %v5813_v38 = vld [vmem:[%s7554_s2 + $0x5b8] ss:$52 sps:$4 sm:$0xff]  }
  0x23   : > { %1596 = vmatpush1.bf16.msra.mxu0 %v5734_v16  ;;  %1810 = vmatprep.subr.bf16.mxu1 %v5852_v48  ;;  %v5788_v16 = vld [vmem:[%s7554_s2 + $0x34c] ss:$52 sps:$4 sm:$0xff]   ;;  %v5968_v47 = vld [vmem:[%s7554_s2 + $0x94] ss:$52 sps:$4 sm:$0xff]   ;;  %v5819_v48 = vld [vmem:[%s7554_s2 + $0x10] ss:$52 sps:$4 sm:$0xff]  }
  0x24   : > { %1597 = vmatprep.subr.bf16.mxu0 %v5735_v17  ;;  %v5890_v17 = vld [vmem:[%s7554_s2 + $0x490] ss:$52 sps:$4 sm:$0xff]   ;;  %v5962_v41 = vld [vmem:[%s7554_s2 + $0x2c] ss:$52 sps:$4 sm:$0xff]  }
  0x25   : > { %v5816_v43 = vld [vmem:[%s7554_s2 + $0x620] ss:$52 sps:$4 sm:$0xff]  }
  0x26   : > { %1811 = vmatpush1.bf16.msra.mxu1 %v5854_v51  ;;  %v5825_v51 = vld [vmem:[%s7554_s2 + $0x78] ss:$52 sps:$4 sm:$0xff]  }
  0x27   : > { %1598 = vmatpush1.bf16.msra.mxu0 %v5737_v18  ;;  %1812 = vmatprep.subr.bf16.mxu1 %v5858_v53  ;;  %v5894_v18 = vld [vmem:[%s7554_s2 + $0x4fc] ss:$52 sps:$4 sm:$0xff]   ;;  %v5969_v53 = vld [vmem:[%s7554_s2 + $0xf8] ss:$52 sps:$4 sm:$0xff]  }
  0x28   : > { %1599 = vmatprep.subr.bf16.mxu0 %v5738_v19  ;;  %v5786_v19 = vld [vmem:[%s7554_s2 + $0x348] ss:$52 sps:$4 sm:$0xff]  }
  0x2a   : > { %1813 = vmatpush1.bf16.msra.mxu1 %v5860_v57  ;;  %v5972_v57 = vld [vmem:[%s7554_s2 + $0x160] ss:$52 sps:$4 sm:$0xff]  }
  0x2b   : > { %1600 = vmatpush1.bf16.msra.mxu0 %v5740_v20  ;;  %1814 = vmatprep.subr.bf16.mxu1 %v5864_v58  ;;  %v5791_v20 = vld [vmem:[%s7554_s2 + $0x3b4] ss:$52 sps:$4 sm:$0xff]  }
  0x2c   : > { %1601 = vmatprep.subr.bf16.mxu0 %v5741_v21  ;;  %v5896_v21 = vld [vmem:[%s7554_s2 + $0x4f8] ss:$52 sps:$4 sm:$0xff]   ;;  %v5831_v58 = vld [vmem:[%s7554_s2 + $0xe0] ss:$52 sps:$4 sm:$0xff]  }
  0x2e   : > { %1815 = vmatpush1.bf16.msra.mxu1 %v5866_v61  ;;  %v5837_v61 = vld [vmem:[%s7554_s2 + $0x148] ss:$52 sps:$4 sm:$0xff]  }
  0x2f   : > { %1602 = vmatpush1.bf16.msra.mxu0 %v5743_v22  ;;  %1816 = vmatprep.subr.bf16.mxu1 %v5870_v63  ;;  %v5900_v22 = vld [vmem:[%s7554_s2 + $0x564] ss:$52 sps:$4 sm:$0xff]   ;;  %v5975_v63 = vld [vmem:[%s7554_s2 + $0x1c8] ss:$52 sps:$4 sm:$0xff]  }
  0x30   : > { %1603 = vmatprep.subr.bf16.mxu0 %v5744_v23  ;;  %v5789_v23 = vld [vmem:[%s7554_s2 + $0x3b0] ss:$52 sps:$4 sm:$0xff]  }
  0x32   : > { %1817 = vmatpush1.bf16.msra.mxu1 %v5872_v3  ;;  %v5978_v3 = vld [vmem:[%s7554_s2 + $0x230] ss:$52 sps:$4 sm:$0xff]  }
  0x33   : > { %1604 = vmatpush1.bf16.msra.mxu0 %v5746_v24  ;;  %1818 = vmatprep.subr.bf16.mxu1 %v5876_v4  ;;  %v5797_v24 = vld [vmem:[%s7554_s2 + $0x41c] ss:$52 sps:$4 sm:$0xff]  }
  0x34   : > { %1605 = vmatprep.subr.bf16.mxu0 %v5747_v25  ;;  %v5902_v25 = vld [vmem:[%s7554_s2 + $0x560] ss:$52 sps:$4 sm:$0xff]   ;;  %v5843_v4 = vld [vmem:[%s7554_s2 + $0x1b0] ss:$52 sps:$4 sm:$0xff]  }
  0x36   : > { %1819 = vmatpush1.bf16.msra.mxu1 %v5878_v7  ;;  %v5849_v7 = vld [vmem:[%s7554_s2 + $0x218] ss:$52 sps:$4 sm:$0xff]  }
  0x37   : > { %1606 = vmatpush1.bf16.msra.mxu0 %v5749_v26  ;;  %1820 = vmatprep.subr.bf16.mxu1 %v5882_v9  ;;  %v5906_v26 = vld [vmem:[%s7554_s2 + $0x5cc] ss:$52 sps:$4 sm:$0xff]  }
  0x38   : > { %1607 = vmatprep.subr.bf16.mxu0 %v5750_v27  ;;  %v5795_v27 = vld [vmem:[%s7554_s2 + $0x418] ss:$52 sps:$4 sm:$0xff]  }
  0x39   : > { %v5981_v9 = vld [vmem:[%s7554_s2 + $0x298] ss:$52 sps:$4 sm:$0xff]  }
  0x3a   : > { %1821 = vmatpush1.bf16.msra.mxu1 %v5884_v12  ;;  %v5855_v12 = vld [vmem:[%s7554_s2 + $0x280] ss:$52 sps:$4 sm:$0xff]  }
  0x3b   : > { %1608 = vmatpush1.bf16.msra.mxu0 %v5752_v30  ;;  %1822 = vmatprep.subr.bf16.mxu1 %v5888_v14  ;;  %v5798_v30 = vld [vmem:[%s7554_s2 + $0x480] ss:$52 sps:$4 sm:$0xff]  }
  0x3c   : > { %1609 = vmatprep.subr.bf16.mxu0 %v5753_v31  ;;  %v5912_v31 = vld [vmem:[%s7554_s2 + $0x634] ss:$52 sps:$4 sm:$0xff]  }
  0x3d   : > { %v5984_v14 = vld [vmem:[%s7554_s2 + $0x300] ss:$52 sps:$4 sm:$0xff]  }
  0x3e   : > { %1823 = vmatpush1.bf16.msra.mxu1 %v5890_v17  ;;  %v5861_v17 = vld [vmem:[%s7554_s2 + $0x2e8] ss:$52 sps:$4 sm:$0xff]  }
  0x3f   : > { %1610 = vmatpush1.bf16.msra.mxu0 %v5755_v34  ;;  %1824 = vmatprep.subr.bf16.mxu1 %v5894_v18  ;;  %v5804_v34 = vld [vmem:[%s7554_s2 + $0x4e8] ss:$52 sps:$4 sm:$0xff]  }
  0x40   : > { %1611 = vmatprep.subr.bf16.mxu0 %v5756_v36  ;;  %v5807_v36 = vld [vmem:[%s7554_s2 + $0x550] ss:$52 sps:$4 sm:$0xff]   ;;  %v5987_v18 = vld [vmem:[%s7554_s2 + $0x368] ss:$52 sps:$4 sm:$0xff]  }
  0x42   : > { %1825 = vmatpush1.bf16.msra.mxu1 %v5896_v21  ;;  %v5990_v21 = vld [vmem:[%s7554_s2 + $0x3d0] ss:$52 sps:$4 sm:$0xff]  }
  0x43   : > { %1612 = vmatpush1.bf16.msra.mxu0 %v5758_v39  ;;  %1826 = vmatprep.subr.bf16.mxu1 %v5900_v22  ;;  %v5818_v39 = vld [vmem:[%s7554_s2 + $0x624] ss:$52 sps:$4 sm:$0xff]   ;;  %v5995_v22 = vld [vmem:[%s7554_s2 + $0x43c] ss:$52 sps:$4 sm:$0xff]  }
  0x44   : > { %1654 = vmatprep.subr.bf16.mxu0 %v5764_v40  ;;  %v5960_v40 = vld [vmem:[%s7554_s2 + $0x28] ss:$52 sps:$4 sm:$0xff]  }
  0x46   : > { %1614 = vmatmul.mubr.bf16.vlgmr.msra.gmra.mrb[0].mxu0 %v6273_v42  ;;  %1827 = vmatpush1.bf16.msra.mxu1 %v5902_v25  ;;  %v5873_v25 = vld [vmem:[%s7554_s2 + $0x3b8] ss:$52 sps:$4 sm:$0xff]  }
  0x47   : > { %1655 = vmatpush1.bf16.msra.mxu0 %v5762_v44  ;;  %1623 = vmatprep.mubr.bf16.mxu0 %v6282_v45  ;;  %v5821_v44 = vld [vmem:[%s7554_s2 + $0x14] ss:$52 sps:$4 sm:$0xff]  }
  0x48   : > { %1656 = vmatprep.subr.bf16.mxu0 %v5767_v46  ;;  %1828 = vmatprep.subr.bf16.mxu1 %v5906_v26  ;;  %v5966_v46 = vld [vmem:[%s7554_s2 + $0x90] ss:$52 sps:$4 sm:$0xff]  }
  0x49   : > { %v5881_v26 = vld [vmem:[%s7554_s2 + $0x424] ss:$52 sps:$4 sm:$0xff]  }
  0x4a   : > { %1829 = vmatpush1.bf16.msra.mxu1 %v5908_v29  ;;  %v5879_v29 = vld [vmem:[%s7554_s2 + $0x420] ss:$52 sps:$4 sm:$0xff]  }
  0x4b   : > { %1657 = vmatpush1.bf16.msra.mxu0 %v5765_v49  ;;  %1830 = vmatprep.subr.bf16.mxu1 %v5912_v31  ;;  %v5827_v49 = vld [vmem:[%s7554_s2 + $0x7c] ss:$52 sps:$4 sm:$0xff]   ;;  %v6001_v31 = vld [vmem:[%s7554_s2 + $0x50c] ss:$52 sps:$4 sm:$0xff]  }
  0x4c   : > { %1658 = vmatprep.subr.bf16.mxu0 %v5770_v50  ;;  %v5971_v50 = vld [vmem:[%s7554_s2 + $0xfc] ss:$52 sps:$4 sm:$0xff]  }
  0x4e   : > { %1624 = vmatmul.mubr.bf16.gmra.mrb[4].mxu0 %v6305_v52  ;;  %1831 = vmatpush1.bf16.msra.mxu1 %v5914_v33  ;;  %v5885_v33 = vld [vmem:[%s7554_s2 + $0x488] ss:$52 sps:$4 sm:$0xff]  }
  0x4f   : > { %1659 = vmatpush1.bf16.msra.mxu0 %v5768_v54  ;;  %1633 = vmatprep.mubr.bf16.mxu0 %v6314_v55  ;;  %v5833_v54 = vld [vmem:[%s7554_s2 + $0xe4] ss:$52 sps:$4 sm:$0xff]  }
  0x50   : > { %1660 = vmatprep.subr.bf16.mxu0 %v5773_v56  ;;  %1946 = vmatprep.subr.bf16.mxu1 %v5962_v41  ;;  %v5974_v56 = vld [vmem:[%s7554_s2 + $0x164] ss:$52 sps:$4 sm:$0xff]  }
  0x51   : > { %1833 = vmatmul.mubr.bf16.vlgmr.msra.gmra.mrb[0].mxu1 %v6273_v42  ;;  %v5897_v41 = vld [vmem:[%s7554_s2 + $0x558] ss:$52 sps:$4 sm:$0xff]  }
  0x52   : > { %1842 = vmatprep.mubr.bf16.mxu1 %v6282_v45  ;;  %1947 = vmatpush1.bf16.msra.mxu1 %v5960_v40  ;;  %v6005_v40 = vld [vmem:[%s7554_s2 + $0x5d8] ss:$52 sps:$4 sm:$0xff]  }
  0x53   : > { %1661 = vmatpush1.bf16.msra.mxu0 %v5771_v59  ;;  %1948 = vmatprep.subr.bf16.mxu1 %v5968_v47  ;;  %v5839_v59 = vld [vmem:[%s7554_s2 + $0x14c] ss:$52 sps:$4 sm:$0xff]   ;;  %v6668_v47 = vld [vmem:[%s7554_s2 + $0x370] ss:$52 sps:$4 sm:$0xff]  }
  0x54   : > { %1662 = vmatprep.subr.bf16.mxu0 %v5776_v60  ;;  %v5977_v60 = vld [vmem:[%s7554_s2 + $0x1cc] ss:$52 sps:$4 sm:$0xff]  }
  0x56   : > { %1634 = vmatmul.mubr.bf16.gmra.mrb[8].mxu0 %v6337_v62  ;;  %1949 = vmatpush1.bf16.msra.mxu1 %v5966_v46  ;;  %v6008_v46 = vld [vmem:[%s7554_s2 + $0x640] ss:$52 sps:$4 sm:$0xff]  }
  0x57   : > { %1663 = vmatpush1.bf16.msra.mxu0 %v5774_v0  ;;  %1643 = vmatprep.mubr.bf16.mxu0 %v6346_v1  ;;  %v5845_v0 = vld [vmem:[%s7554_s2 + $0x1b4] ss:$52 sps:$4 sm:$0xff]  }
  0x58   : > { %1664 = vmatprep.subr.bf16.mxu0 %v5779_v2  ;;  %1950 = vmatprep.subr.bf16.mxu1 %v5971_v50  ;;  %v5980_v2 = vld [vmem:[%s7554_s2 + $0x234] ss:$52 sps:$4 sm:$0xff]   ;;  %v6679_v50 = vld [vmem:[%s7554_s2 + $0x30] ss:$52 sps:$4 sm:$0xff]  }
  0x59   : > { %1843 = vmatmul.mubr.bf16.gmra.mrb[4].mxu1 %v6305_v52 }
  0x5a   : > { %1852 = vmatprep.mubr.bf16.mxu1 %v6314_v55  ;;  %1951 = vmatpush1.bf16.msra.mxu1 %v5969_v53  ;;  %v5909_v53 = vld [vmem:[%s7554_s2 + $0x628] ss:$52 sps:$4 sm:$0xff]  }
  0x5b   : > { %1665 = vmatpush1.bf16.msra.mxu0 %v5777_v5  ;;  %1952 = vmatprep.subr.bf16.mxu1 %v5974_v56  ;;  %v5851_v5 = vld [vmem:[%s7554_s2 + $0x21c] ss:$52 sps:$4 sm:$0xff]   ;;  %v6698_v56 = vld [vmem:[%s7554_s2 + $0x98] ss:$52 sps:$4 sm:$0xff]  }
  0x5c   : > { %1666 = vmatprep.subr.bf16.mxu0 %v5782_v6  ;;  %v5983_v6 = vld [vmem:[%s7554_s2 + $0x29c] ss:$52 sps:$4 sm:$0xff]  }
  0x5e   : > { %1644 = vmatmul.mubr.bf16.gmra.mrb[12].mxu0 %v6369_v8  ;;  %1953 = vmatpush1.bf16.msra.mxu1 %v5972_v57  ;;  %v6705_v57 = vld [vmem:[%s7554_s2 + $0x440] ss:$52 sps:$4 sm:$0xff]  }
  0x5f   : > { %1667 = vmatpush1.bf16.msra.mxu0 %v5780_v10  ;;  %1686 = vmatprep.mubr.bf16.mxu0 %v6184_v13  ;;  %v5857_v10 = vld [vmem:[%s7554_s2 + $0x284] ss:$52 sps:$4 sm:$0xff]  }
  0x60   : > { %1668 = vmatprep.subr.bf16.mxu0 %v5785_v11  ;;  %1954 = vmatprep.subr.bf16.mxu1 %v5977_v60  ;;  %v5986_v11 = vld [vmem:[%s7554_s2 + $0x304] ss:$52 sps:$4 sm:$0xff]   ;;  %v6727_v60 = vld [vmem:[%s7554_s2 + $0x4a8] ss:$52 sps:$4 sm:$0xff]  }
  0x61   : > { %1853 = vmatmul.mubr.bf16.gmra.mrb[8].mxu1 %v6337_v62 }
  0x62   : > { %1862 = vmatprep.mubr.bf16.mxu1 %v6346_v1  ;;  %1955 = vmatpush1.bf16.msra.mxu1 %v5975_v63  ;;  %v6733_v63 = vld [vmem:[%s6178_s28 + $0x14] ss:$8 sps:$4 sm:$0xff]  }
  0x63   : > { %1669 = vmatpush1.bf16.msra.mxu0 %v5783_v15  ;;  %1956 = vmatprep.subr.bf16.mxu1 %v5980_v2  ;;  %v5863_v15 = vld [vmem:[%s7554_s2 + $0x2ec] ss:$52 sps:$4 sm:$0xff]   ;;  %v6744_v2 = vld [vmem:[%s7554_s2 + $0x168] ss:$52 sps:$4 sm:$0xff]  }
  0x64   : > { %1670 = vmatprep.subr.bf16.mxu0 %v5788_v16  ;;  %v5989_v16 = vld [vmem:[%s7554_s2 + $0x36c] ss:$52 sps:$4 sm:$0xff]  }
  0x66   : > { %1957 = vmatpush1.bf16.msra.mxu1 %v5978_v3  ;;  %v6751_v3 = vld [vmem:[%s7554_s2 + $0x510] ss:$52 sps:$4 sm:$0xff]  }
  0x67   : > { %1671 = vmatpush1.bf16.msra.mxu0 %v5786_v19  ;;  %1958 = vmatprep.subr.bf16.mxu1 %v5983_v6  ;;  %v5869_v19 = vld [vmem:[%s7554_s2 + $0x354] ss:$52 sps:$4 sm:$0xff]   ;;  %v6763_v6 = vld [vmem:[%s7554_s2 + $0x1d0] ss:$52 sps:$4 sm:$0xff]  }
  0x68   : > { %1672 = vmatprep.subr.bf16.mxu0 %v5791_v20  ;;  %v5992_v20 = vld [vmem:[%s7554_s2 + $0x3d4] ss:$52 sps:$4 sm:$0xff]  }
  0x69   : > { %1863 = vmatmul.mubr.bf16.gmra.mrb[12].mxu1 %v6369_v8 }
  0x6a   : > { %1978 = vmatprep.mubr.bf16.mxu1 %v6184_v13  ;;  %1959 = vmatpush1.bf16.msra.mxu1 %v5981_v9  ;;  %v5924_v9 = vld [vmem:[%s7554_s2 + $0x158] ss:$52 sps:$4 sm:$0xff]  }
  0x6b   : > { %1673 = vmatpush1.bf16.msra.mxu0 %v5789_v23  ;;  %1960 = vmatprep.subr.bf16.mxu1 %v5986_v11  ;;  %v5875_v23 = vld [vmem:[%s7554_s2 + $0x3bc] ss:$52 sps:$4 sm:$0xff]   ;;  %v5927_v11 = vld [vmem:[%s7554_s2 + $0x1c0] ss:$52 sps:$4 sm:$0xff]  }
  0x6c   : > { %1674 = vmatprep.subr.bf16.mxu0 %v5797_v24  ;;  %v5993_v24 = vld [vmem:[%s7554_s2 + $0x438] ss:$52 sps:$4 sm:$0xff]  }
  0x6e   : > { %1961 = vmatpush1.bf16.msra.mxu1 %v5984_v14  ;;  %v6803_v14 = vld [vmem:[%s7554_s2 + $0x2a0] ss:$52 sps:$4 sm:$0xff]  }
  0x6f   : > { %1675 = vmatpush1.bf16.msra.mxu0 %v5795_v27  ;;  %1962 = vmatprep.subr.bf16.mxu1 %v5989_v16  ;;  %v5998_v27 = vld [vmem:[%s7554_s2 + $0x4a4] ss:$52 sps:$4 sm:$0xff]   ;;  %v5935_v16 = vld [vmem:[%s7554_s2 + $0x294] ss:$52 sps:$4 sm:$0xff]  }
  0x70   : > { %1676 = vmatprep.subr.bf16.mxu0 %v5800_v28  ;;  %v5996_v28 = vld [vmem:[%s7554_s2 + $0x4a0] ss:$52 sps:$4 sm:$0xff]  }
  0x72   : > { %1963 = vmatpush1.bf16.msra.mxu1 %v5987_v18  ;;  %v5933_v18 = vld [vmem:[%s7554_s2 + $0x290] ss:$52 sps:$4 sm:$0xff]  }
  0x73   : > { %1677 = vmatpush1.bf16.msra.mxu0 %v5798_v30  ;;  %1964 = vmatprep.subr.bf16.mxu1 %v5992_v20  ;;  %v5887_v30 = vld [vmem:[%s7554_s2 + $0x48c] ss:$52 sps:$4 sm:$0xff]  }
  0x74   : > { %1678 = vmatprep.subr.bf16.mxu0 %v5806_v32  ;;  %v5999_v32 = vld [vmem:[%s7554_s2 + $0x508] ss:$52 sps:$4 sm:$0xff]   ;;  %v5936_v20 = vld [vmem:[%s7554_s2 + $0x2f8] ss:$52 sps:$4 sm:$0xff]  }
  0x76   : > { %1965 = vmatpush1.bf16.msra.mxu1 %v5990_v21  ;;  %v6843_v21 = vld [vmem:[%s6178_s28 + $0x4] ss:$8 sps:$4 sm:$0xff]  }
  0x77   : > { %1679 = vmatpush1.bf16.msra.mxu0 %v5804_v34  ;;  %1966 = vmatprep.subr.bf16.mxu1 %v5995_v22  ;;  %v6004_v34 = vld [vmem:[%s7554_s2 + $0x574] ss:$52 sps:$4 sm:$0xff]   ;;  %v5941_v22 = vld [vmem:[%s7554_s2 + $0x364] ss:$52 sps:$4 sm:$0xff]  }
  0x78   : > { %1680 = vmatprep.subr.bf16.mxu0 %v5809_v35  ;;  %v5893_v35 = vld [vmem:[%s7554_s2 + $0x4f4] ss:$52 sps:$4 sm:$0xff]  }
  0x7a   : > { %1967 = vmatpush1.bf16.msra.mxu1 %v5993_v24  ;;  %v5939_v24 = vld [vmem:[%s7554_s2 + $0x360] ss:$52 sps:$4 sm:$0xff]  }
  0x7b   : > { %1681 = vmatpush1.bf16.msra.mxu0 %v5807_v36  ;;  %1968 = vmatprep.subr.bf16.mxu1 %v5998_v27  ;;  %v6002_v36 = vld [vmem:[%s7554_s2 + $0x570] ss:$52 sps:$4 sm:$0xff]   ;;  %v5947_v27 = vld [vmem:[%s7554_s2 + $0x434] ss:$52 sps:$4 sm:$0xff]  }
  0x7c   : > { %1682 = vmatprep.subr.bf16.mxu0 %v5815_v37  ;;  %v6007_v37 = vld [vmem:[%s7554_s2 + $0x5dc] ss:$52 sps:$4 sm:$0xff]  }
  0x7e   : > { %1969 = vmatpush1.bf16.msra.mxu1 %v5996_v28  ;;  %v5945_v28 = vld [vmem:[%s7554_s2 + $0x430] ss:$52 sps:$4 sm:$0xff]  }
  0x7f   : > { %1683 = vmatpush1.bf16.msra.mxu0 %v5813_v38  ;;  %1970 = vmatprep.subr.bf16.mxu1 %v6001_v31  ;;  %v5891_v38 = vld [vmem:[%s7554_s2 + $0x4f0] ss:$52 sps:$4 sm:$0xff]   ;;  %v5951_v31 = vld [vmem:[%s7554_s2 + $0x500] ss:$52 sps:$4 sm:$0xff]  }
  0x80   : > { %1684 = vmatprep.subr.bf16.mxu0 %v5818_v39  ;;  %v5899_v39 = vld [vmem:[%s7554_s2 + $0x55c] ss:$52 sps:$4 sm:$0xff]  }
  0x82   : > { %1971 = vmatpush1.bf16.msra.mxu1 %v5999_v32  ;;  %v5956_v32 = vld [vmem:[%s7554_s2 + $0x56c] ss:$52 sps:$4 sm:$0xff]  }
  0x83   : > { %1685 = vmatpush1.bf16.msra.mxu0 %v5816_v43  ;;  %1972 = vmatprep.subr.bf16.mxu1 %v6004_v34  ;;  %v6010_v43 = vld [vmem:[%s7554_s2 + $0x644] ss:$52 sps:$4 sm:$0xff]   ;;  %v5959_v34 = vld [vmem:[%s7554_s2 + $0x5d4] ss:$52 sps:$4 sm:$0xff]  }
  0x84   : > { %1727 = vmatprep.subr.bf16.mxu0 %v5821_v44  ;;  %v5905_v44 = vld [vmem:[%s7554_s2 + $0x5c4] ss:$52 sps:$4 sm:$0xff]  }
  0x86   : > { %1687 = vmatmul.mubr.bf16.vlgmr.msra.gmra.mrb[16].mxu0 %v6273_v42  ;;  %1973 = vmatpush1.bf16.msra.mxu1 %v6002_v36  ;;  %v5957_v36 = vld [vmem:[%s7554_s2 + $0x5d0] ss:$52 sps:$4 sm:$0xff]  }
  0x87   : > { %1728 = vmatpush1.bf16.msra.mxu0 %v5819_v48  ;;  %1696 = vmatprep.mubr.bf16.mxu0 %v6282_v45  ;;  %v5903_v48 = vld [vmem:[%s7554_s2 + $0x5c0] ss:$52 sps:$4 sm:$0xff]  }
  0x88   : > { %1729 = vmatprep.subr.bf16.mxu0 %v5827_v49  ;;  %1974 = vmatprep.subr.bf16.mxu1 %v6007_v37  ;;  %v5911_v49 = vld [vmem:[%s7554_s2 + $0x62c] ss:$52 sps:$4 sm:$0xff]   ;;  %v5965_v37 = vld [vmem:[%s7554_s2 + $0x63c] ss:$52 sps:$4 sm:$0xff]  }
  0x8a   : > { %1975 = vmatpush1.bf16.msra.mxu1 %v6005_v40  ;;  %v4604_v40 = vld [vmem:[%s7557_s5] ss:$0 sm:$0xff] }
  0x8b   : > { %1730 = vmatpush1.bf16.msra.mxu0 %v5825_v51  ;;  %1976 = vmatprep.subr.bf16.mxu1 %v6010_v43  ;;  %v6685_v51 = vld [vmem:[%s7554_s2 + $0x3d8] ss:$52 sps:$4 sm:$0xff]   ;;  %v4606_v43 = vld [vmem:[%s7557_s5 + $0x1] ss:$0 sm:$0xff] }
  0x8c   : > { %1731 = vmatprep.subr.bf16.mxu0 %v5833_v54  ;;  %v5917_v54 = vld [vmem:[%s7554_s2 + $0x24] ss:$52 sps:$4 sm:$0xff]  }
  0x8e   : > { %1697 = vmatmul.mubr.bf16.gmra.mrb[20].mxu0 %v6305_v52  ;;  %1977 = vmatpush1.bf16.msra.mxu1 %v6008_v46 }
  0x8f   : > { %1732 = vmatpush1.bf16.msra.mxu0 %v5831_v58  ;;  %1706 = vmatprep.mubr.bf16.mxu0 %v6314_v55  ;;  %v5920_v58 = vld [vmem:[%s7554_s2 + $0x8c] ss:$52 sps:$4 sm:$0xff]  }
  0x90   : > { %1733 = vmatprep.subr.bf16.mxu0 %v5839_v59  ;;  %5599 = vmatprep.subr.bf16.mxu1 %v6668_v47  ;;  %v6720_v59 = vld [vmem:[%s6178_s28] ss:$8 sps:$4 sm:$0xff]  }
  0x91   : > { %1979 = vmatmul.mubr.bf16.vlgmr.msra.gmra.mrb[16].mxu1 %v6273_v42  ;;  %v5915_v42 = vld [vmem:[%s7554_s2 + $0x20] ss:$52 sps:$4 sm:$0xff]  }
  0x92   : > { %5607 = vmatpush3.bf16.msra.mxu1 %v6679_v50  ;;  %1988 = vmatprep.mubr.bf16.mxu1 %v6282_v45  ;;  %v6717_v45 = vld [vmem:[%s7554_s2 + $0x100] ss:$52 sps:$4 sm:$0xff]  }
  0x93   : > { %1734 = vmatpush1.bf16.msra.mxu0 %v5837_v61  ;;  %5600 = vmatprep.subr.bf16.mxu1 %v6685_v51  ;;  %v5918_v61 = vld [vmem:[%s7554_s2 + $0x88] ss:$52 sps:$4 sm:$0xff]  }
  0x94   : > { %1735 = vmatprep.subr.bf16.mxu0 %v5845_v0  ;;  %v5923_v0 = vld [vmem:[%s7554_s2 + $0xf4] ss:$52 sps:$4 sm:$0xff]  }
  0x96   : > { %1707 = vmatmul.mubr.bf16.gmra.mrb[24].mxu0 %v6337_v62  ;;  %5608 = vmatpush3.bf16.msra.mxu1 %v6698_v56 }
  0x97   : > { %1736 = vmatpush1.bf16.msra.mxu0 %v5843_v4  ;;  %1716 = vmatprep.mubr.bf16.mxu0 %v6346_v1  ;;  %v5921_v4 = vld [vmem:[%s7554_s2 + $0xf0] ss:$52 sps:$4 sm:$0xff]  }
  0x98   : > { %1737 = vmatprep.subr.bf16.mxu0 %v5851_v5  ;;  %5601 = vmatprep.subr.bf16.mxu1 %v6705_v57  ;;  %v5926_v5 = vld [vmem:[%s7554_s2 + $0x15c] ss:$52 sps:$4 sm:$0xff]  }
  0x99   : > { %1989 = vmatmul.mubr.bf16.gmra.mrb[20].mxu1 %v6305_v52 }
  0x9a   : > { %5609 = vmatpush3.bf16.msra.mxu1 %v6717_v45  ;;  %1998 = vmatprep.mubr.bf16.mxu1 %v6314_v55 }
  0x9b   : > { %1738 = vmatpush1.bf16.msra.mxu0 %v5849_v7  ;;  %5602 = vmatprep.subr.bf16.mxu1 %v6727_v60  ;;  %v6770_v7 = vld [vmem:[%s7554_s2 + $0x578] ss:$52 sps:$4 sm:$0xff]  }
  0x9c   : > { %1739 = vmatprep.subr.bf16.mxu0 %v5857_v10  ;;  %v5929_v10 = vld [vmem:[%s7554_s2 + $0x1c4] ss:$52 sps:$4 sm:$0xff]  }
  0x9e   : > { %1717 = vmatmul.mubr.bf16.gmra.mrb[28].mxu0 %v6369_v8  ;;  %5610 = vmatpush3.bf16.msra.mxu1 %v6744_v2 }
  0x9f   : > { %1740 = vmatpush1.bf16.msra.mxu0 %v5855_v12  ;;  %1759 = vmatprep.mubr.bf16.mxu0 %v6184_v13  ;;  %v5867_v13 = vld [vmem:[%s7554_s2 + $0x350] ss:$52 sps:$4 sm:$0xff]   ;;  %v5932_v12 = vld [vmem:[%s7554_s2 + $0x22c] ss:$52 sps:$4 sm:$0xff]  }
  0xa0   : > { %1741 = vmatprep.subr.bf16.mxu0 %v5863_v15  ;;  %5603 = vmatprep.subr.bf16.mxu1 %v6751_v3  ;;  %v5930_v15 = vld [vmem:[%s7554_s2 + $0x228] ss:$52 sps:$4 sm:$0xff]  }
  0xa1   : > { %1999 = vmatmul.mubr.bf16.gmra.mrb[24].mxu1 %v6337_v62 }
  0xa2   : > { %5611 = vmatpush3.bf16.msra.mxu1 %v6763_v6  ;;  %2008 = vmatprep.mubr.bf16.mxu1 %v6346_v1 }
  0xa3   : > { %1742 = vmatpush1.bf16.msra.mxu0 %v5861_v17  ;;  %5604 = vmatprep.subr.bf16.mxu1 %v6770_v7  ;;  %v6824_v17 = vld [vmem:[%s7554_s2 + $0x308] ss:$52 sps:$4 sm:$0xff]  }
  0xa4   : > { %1743 = vmatprep.subr.bf16.mxu0 %v5869_v19  ;;  %v5938_v19 = vld [vmem:[%s7554_s2 + $0x2fc] ss:$52 sps:$4 sm:$0xff]  }
  0xa7   : > { %1744 = vmatpush1.bf16.msra.mxu0 %v5867_v13  ;;  %v6079_v13 = vld [vmem:[%s6178_s28 + $0x20] ss:$8 sps:$4 sm:$0xff]  }
  0xa8   : > { %1745 = vmatprep.subr.bf16.mxu0 %v5875_v23  ;;  %v6080_v23 = vld [vmem:[%s6178_s28 + $0x34] ss:$8 sps:$4 sm:$0xff]  }
  0xa9   : > { %2009 = vmatmul.mubr.bf16.gmra.mrb[28].mxu1 %v6369_v8 }
  0xab   : > { %1746 = vmatpush1.bf16.msra.mxu0 %v5873_v25  ;;  %v5944_v25 = vld [vmem:[%s7554_s2 + $0x3cc] ss:$52 sps:$4 sm:$0xff]  }
  0xac   : > { %1747 = vmatprep.subr.bf16.mxu0 %v5881_v26  ;;  %v5942_v26 = vld [vmem:[%s7554_s2 + $0x3c8] ss:$52 sps:$4 sm:$0xff]  }
  0xaf   : > { %1748 = vmatpush1.bf16.msra.mxu0 %v5879_v29  ;;  %v5950_v29 = vld [vmem:[%s7554_s2 + $0x49c] ss:$52 sps:$4 sm:$0xff]  }
  0xb0   : > { %1749 = vmatprep.subr.bf16.mxu0 %v5887_v30  ;;  %v5948_v30 = vld [vmem:[%s7554_s2 + $0x498] ss:$52 sps:$4 sm:$0xff]  }
  0xb3   : > { %1750 = vmatpush1.bf16.msra.mxu0 %v5885_v33  ;;  %v5954_v33 = vld [vmem:[%s7554_s2 + $0x568] ss:$52 sps:$4 sm:$0xff]  }
  0xb4   : > { %1751 = vmatprep.subr.bf16.mxu0 %v5893_v35  ;;  %v4607_v35 = vld [vmem:[%s7553_s1 + $0x40] sm:$0xff] }
  0xb7   : > { %1752 = vmatpush1.bf16.msra.mxu0 %v5891_v38  ;;  %v5963_v38 = vld [vmem:[%s7554_s2 + $0x638] ss:$52 sps:$4 sm:$0xff]  }
  0xb8   : > { %1753 = vmatprep.subr.bf16.mxu0 %v5899_v39  ;;  %v6081_v39 = vld [vmem:[%s6178_s28 + $0x10] ss:$8 sps:$4 sm:$0xff]  }
  0xbb   : > { %1754 = vmatpush1.bf16.msra.mxu0 %v5897_v41 }
  0xbc   : > { %1755 = vmatprep.subr.bf16.mxu0 %v5905_v44 }
  0xbf   : > { %1756 = vmatpush1.bf16.msra.mxu0 %v5903_v48 }
  0xc0   : > { %1757 = vmatprep.subr.bf16.mxu0 %v5911_v49 }
  0xc3   : > { %1758 = vmatpush1.bf16.msra.mxu0 %v5909_v53 }
  0xc4   : > { %1873 = vmatprep.subr.bf16.mxu0 %v5917_v54 }
  0xc6   : > { %1760 = vmatmul.mubr.bf16.vlgmr.msra.gmra.mrb[32].mxu0 %v6720_v59 }
  0xc7   : > { %1874 = vmatpush1.bf16.msra.mxu0 %v5915_v42  ;;  %1769 = vmatprep.mubr.bf16.mxu0 %v6733_v63 }
  0xc8   : > { %1875 = vmatprep.subr.bf16.mxu0 %v5920_v58 }
  0xcb   : > { %1876 = vmatpush1.bf16.msra.mxu0 %v5918_v61 }
  0xcc   : > { %1877 = vmatprep.subr.bf16.mxu0 %v5923_v0 }
  0xce   : > { %1770 = vmatmul.mubr.bf16.gmra.mrb[36].mxu0 %v6305_v52  ;;  %v6784_v52 = vld [vmem:[%s7554_s2 + $0x238] ss:$52 sps:$4 sm:$0xff]  }
  0xcf   : > { %1878 = vmatpush1.bf16.msra.mxu0 %v5921_v4  ;;  %1779 = vmatprep.mubr.bf16.mxu0 %v6314_v55  ;;  %v6791_v55 = vld [vmem:[%s7554_s2 + $0x5e0] ss:$52 sps:$4 sm:$0xff]  }
  0xd0   : > { %1879 = vmatprep.subr.bf16.mxu0 %v5926_v5  ;;  %5612 = vmatpush3.bf16.msra.mxu1 %v6784_v52 }
  0xd1   : > { %5605 = vmatprep.subr.bf16.mxu1 %v6791_v55 }
  0xd3   : > { %1880 = vmatpush1.bf16.msra.mxu0 %v5924_v9 }
  0xd4   : > { %1881 = vmatprep.subr.bf16.mxu0 %v5929_v10  ;;  %5613 = vmatpush3.bf16.msra.mxu1 %v6803_v14 }
  0xd6   : > { %1780 = vmatmul.mubr.bf16.gmra.mrb[40].mxu0 %v6337_v62  ;;  %v6818_v62 = vld [vmem:[%s7554_s2 + $0x648] ss:$52 sps:$4 sm:$0xff]  }
  0xd7   : > { %1882 = vmatpush1.bf16.msra.mxu0 %v5927_v11  ;;  %1789 = vmatprep.mubr.bf16.mxu0 %v6346_v1  ;;  %v6827_v1 = vld [vmem:[%s6178_s28 + $0x24] ss:$8 sps:$4 sm:$0xff]  }
  0xd8   : > { %1883 = vmatprep.subr.bf16.mxu0 %v5932_v12  ;;  %2067 = vmatprep.mubr.bf16.mxu1 %v6827_v1 }
  0xd9   : > { %5606 = vmatprep.subr.bf16.mxu1 %v6818_v62 }
  0xda   : > { %5614 = vmatpush3.bf16.msra.mxu1 %v6824_v17 }
  0xdb   : > { %1884 = vmatpush1.bf16.msra.mxu0 %v5930_v15 }
  0xdc   : > { %1885 = vmatprep.subr.bf16.mxu0 %v5935_v16 }
  0xdd   : > { %2068 = vmatmul.mubr.bf16.vlgmr.msra.gmra.mrb[32].mxu1 %v6079_v13 }
  0xde   : > { %1790 = vmatmul.mubr.bf16.gmra.mrb[44].mxu0 %v6369_v8  ;;  %2075 = vmatprep.mubr.bf16.mxu1 %v6080_v23 }
  0xdf   : > { %1886 = vmatpush1.bf16.msra.mxu0 %v5933_v18  ;;  %1905 = vmatprep.mubr.bf16.mxu0 %v6843_v21 }
  0xe0   : > { %1887 = vmatprep.subr.bf16.mxu0 %v5938_v19 }
  0xe3   : > { %1888 = vmatpush1.bf16.msra.mxu0 %v5936_v20 }
  0xe4   : > { %1889 = vmatprep.subr.bf16.mxu0 %v5941_v22 }
  0xe5   : > { %2076 = vmatmul.mubr.bf16.gmra.mrb[36].mxu1 %v6369_v8  ;;  %v5953_v8 = vld [vmem:[%s7554_s2 + $0x504] ss:$52 sps:$4 sm:$0xff]  }
  0xe6   : > { %5119 = vmatprep.mubr.msk.f32.mxu1 %vm2140_vm0, %v4607_v35 }
  0xe7   : > { %1890 = vmatpush1.bf16.msra.mxu0 %v5939_v24 }
  0xe8   : > { %1891 = vmatprep.subr.bf16.mxu0 %v5944_v25 }
  0xeb   : > { %1892 = vmatpush1.bf16.msra.mxu0 %v5942_v26 }
  0xec   : > { %1893 = vmatprep.subr.bf16.mxu0 %v5947_v27  ;;  %v4663_v27 = vld [vmem:[%s7553_s1 + $0x100] sm:$0xff] }
  0xef   : > { %1894 = vmatpush1.bf16.msra.mxu0 %v5945_v28 }
  0xf0   : > { %1895 = vmatprep.subr.bf16.mxu0 %v5950_v29 }
  0xf3   : > { %1896 = vmatpush1.bf16.msra.mxu0 %v5948_v30 }
  0xf4   : > { %1897 = vmatprep.subr.bf16.mxu0 %v5953_v8 }
  0xf7   : > { %1898 = vmatpush1.bf16.msra.mxu0 %v5951_v31 }
  0xf8   : > { %1899 = vmatprep.subr.bf16.mxu0 %v5956_v32 }
  0xfb   : > { %1900 = vmatpush1.bf16.msra.mxu0 %v5954_v33 }
  0xfc   : > { %1901 = vmatprep.subr.bf16.mxu0 %v5959_v34 }
  0xff   : > { %1902 = vmatpush1.bf16.msra.mxu0 %v5957_v36 }
 0x100   : > { %1903 = vmatprep.subr.bf16.mxu0 %v5965_v37 }
 0x103   : > { %1904 = vmatpush1.bf16.msra.mxu0 %v5963_v38 }
 0x104   : > { %4863 = vmatprep.subr.bf16.mxu0 %v6668_v47 }
 0x106   : > { %1906 = vmatmul.mubr.bf16.vlgmr.msra.gmra.mrb[48].mxu0 %v6720_v59 }
 0x107   : > { %1915 = vmatprep.mubr.bf16.mxu0 %v6733_v63  ;;  %4864 = vmatpush3.bf16.msra.mxu0 %v6679_v50 }
 0x108   : > { %4865 = vmatprep.subr.bf16.mxu0 %v6685_v51 }
 0x10b   : > { %4866 = vmatpush3.bf16.msra.mxu0 %v6698_v56  ;;  %v6082_v56 = vld [vmem:[%s6178_s28 + $0x30] ss:$8 sps:$4 sm:$0xff]  }
 0x10c   : > { %4867 = vmatprep.subr.bf16.mxu0 %v6705_v57 }
 0x10e   : > { %1916 = vmatmul.mubr.bf16.gmra.mrb[52].mxu0 %v6081_v39 }
 0x10f   : > { %1925 = vmatprep.mubr.bf16.mxu0 %v6827_v1  ;;  %4868 = vmatpush3.bf16.msra.mxu0 %v6717_v45 }
 0x110   : > { %4869 = vmatprep.subr.bf16.mxu0 %v6727_v60 }
 0x113   : > { %4870 = vmatpush3.bf16.msra.mxu0 %v6744_v2 }
 0x114   : > { %4871 = vmatprep.subr.bf16.mxu0 %v6751_v3 }
 0x116   : > { %1926 = vmatmul.mubr.bf16.gmra.mrb[56].mxu0 %v6079_v13 }
 0x117   : > { %1935 = vmatprep.mubr.bf16.mxu0 %v6080_v23  ;;  %4872 = vmatpush3.bf16.msra.mxu0 %v6763_v6 }
 0x118   : > { %4873 = vmatprep.subr.bf16.mxu0 %v6770_v7 }
 0x119   : > { %v1615_v41 = vpop.f32.mrb[0].mxu0 }
 0x11a   : > { %v2091_v44 = vmul.f32 %v4604_v40, %v1615_v41  ;;  %v1617_v46 = vpop.f32.mrb[1].mxu0 }
 0x11b   : > { %v1619_v47 = vpop.f32.mrb[2].mxu0  ;;  %4874 = vmatpush3.bf16.msra.mxu0 %v6784_v52 }
 0x11c   : > { %v2107_v48 = vadd.f32 %v4606_v43, %v2091_v44  ;;  %v2092_v49 = vmul.f32 %v4604_v40, %v1619_v47  ;;  %v1621_v50 = vpop.f32.mrb[3].mxu0  ;;  %4875 = vmatprep.subr.bf16.mxu0 %v6791_v55 }
 0x11d   : > { %v6924_v51 = vpack.c.bf16 %v1621_v50, %v1617_v46 }
 0x11e   : > { %v2115_v53 = vmax.f32 %v2107_v48, 0.0  ;;  %v2108_v54 = vadd.f32 %v4606_v43, %v2092_v49  ;;  %1936 = vmatmul.mubr.bf16.gmra.mrb[60].mxu0 %v6082_v56 }
 0x11f   : > { %4876 = vmatpush3.bf16.msra.mxu0 %v6803_v14  ;;  %2051 = vmatprep.mubr.bf16.mxu0 %v6843_v21 }
 0x120   : > { %v2116_v57 = vmax.f32 %v2108_v54, 0.0  ;;  %4877 = vmatprep.subr.bf16.mxu0 %v6818_v62 }
 0x121   : > { %v1625_v42 = vpop.f32.mrb[4].mxu0 }
 0x122   : > { %v2093_v58 = vmul.f32 %v4604_v40, %v1625_v42  ;;  %v1627_v45 = vpop.f32.mrb[5].mxu0  ;;  %v6930_v60 = vpack.c.bf16 %v2116_v57, %v2115_v53 }
 0x123   : > { %v1629_v61 = vpop.f32.mrb[6].mxu0  ;;  %4878 = vmatpush3.bf16.msra.mxu0 %v6824_v17 }
 0x124   : > { %v2109_v0 = vadd.f32 %v4606_v43, %v2093_v58  ;;  %v2094_v2 = vmul.f32 %v4604_v40, %v1629_v61  ;;  %v1631_v3 = vpop.f32.mrb[7].mxu0  ;;  %v1834_v29 = vpop.f32.mrb[0].mxu1 }
 0x125   : > { %v6933_v4 = vpack.c.bf16 %v1631_v3, %v1627_v45  ;;  %v1836_v30 = vpop.f32.mrb[1].mxu1 }
 0x126   : > { %v2117_v5 = vmax.f32 %v2109_v0, 0.0  ;;  %v2110_v6 = vadd.f32 %v4606_v43, %v2094_v2  ;;  %2052 = vmatmul.mubr.bf16.vlgmr.msra.gmra.mrb[64].mxu0 %v6720_v59  ;;  %v1838_v8 = vpop.f32.mrb[2].mxu1 }
 0x127   : > { %2059 = vmatprep.mubr.bf16.mxu0 %v6733_v63  ;;  %v5535_v31 = vpack.c.bf16 %v1838_v8, %v1834_v29  ;;  %v1840_v32 = vpop.f32.mrb[3].mxu1  ;;  %v4608_v29 = vld [vmem:[%s7553_s1 + $0x48] sm:$0xff] }
 0x128   : > { %v2118_v7 = vmax.f32 %v2110_v6, 0.0  ;;  %v5551_v33 = vpack.c.bf16 %v1840_v32, %v1836_v30  ;;  %v4609_v30 = vld [vmem:[%s7553_s1 + $0x50] sm:$0xff]  ;;  %v4680_v8 = vld [vmem:[%s7553_s1 + $0x148] sm:$0xff]  ;;  %v4610_v32 = vld [vmem:[%s7553_s1 + $0x58] sm:$0xff] }
 0x129   : > { %v1635_v9 = vpop.f32.mrb[8].mxu0  ;;  %5536 = vmatprep.subr.bf16.mxu0 %v5535_v31 }
 0x12a   : > { %v6937_v10 = vpack.c.bf16 %v2118_v7, %v2117_v5  ;;  %v2095_v52 = vmul.f32 %v4604_v40, %v1635_v9  ;;  %v1637_v55 = vpop.f32.mrb[9].mxu0  ;;  %5538 = vmatpush3.bf16.msra.mxu0 %v5535_v31  ;;  %v4681_v31 = vld [vmem:[%s7553_s1 + $0x150] sm:$0xff] }
 0x12b   : > { %v1639_v11 = vpop.f32.mrb[10].mxu0 }
 0x12c   : > { %v2111_v12 = vadd.f32 %v4606_v43, %v2095_v52  ;;  %v2096_v14 = vmul.f32 %v4604_v40, %v1639_v11  ;;  %v1641_v15 = vpop.f32.mrb[11].mxu0  ;;  %v1844_v34 = vpop.f32.mrb[4].mxu1 }
 0x12d   : > { %v6939_v16 = vpack.c.bf16 %v1641_v15, %v1637_v55  ;;  %v1846_v35 = vpop.f32.mrb[5].mxu1  ;;  %v4664_v55 = vld [vmem:[%s7553_s1 + $0x108] sm:$0xff] }
 0x12e   : > { %v2119_v62 = vmax.f32 %v2111_v12, 0.0  ;;  %v2112_v17 = vadd.f32 %v4606_v43, %v2096_v14  ;;  %2060 = vmatmul.mubr.bf16.gmra.mrb[68].mxu0 %v6081_v39  ;;  %v1848_v36 = vpop.f32.mrb[6].mxu1  ;;  %v4665_v12 = vld [vmem:[%s7553_s1 + $0x110] sm:$0xff] }
 0x12f   : > { %5231 = vmatprep.mubr.msk.f32.mxu0 %vm2140_vm0, %v4663_v27  ;;  %v5539_v37 = vpack.c.bf16 %v1848_v36, %v1844_v34  ;;  %v1850_v38 = vpop.f32.mrb[7].mxu1  ;;  %v4679_v27 = vld [vmem:[%s7553_s1 + $0x140] sm:$0xff]  ;;  %v4613_v36 = vld [vmem:[%s7553_s1 + $0x70] sm:$0xff] }
 0x130   : > { %v2120_v1 = vmax.f32 %v2112_v17, 0.0  ;;  %v5555_v39 = vpack.c.bf16 %v1850_v38, %v1846_v35  ;;  %v4683_v34 = vld [vmem:[%s7553_s1 + $0x160] sm:$0xff]  ;;  %v4612_v35 = vld [vmem:[%s7553_s1 + $0x68] sm:$0xff]  ;;  %v4614_v38 = vld [vmem:[%s7553_s1 + $0x78] sm:$0xff] }
 0x131   : > { %v1645_v18 = vpop.f32.mrb[12].mxu0  ;;  %5540 = vmatprep.subr.bf16.mxu0 %v5539_v37 }
 0x132   : > { %v2097_v59 = vmul.f32 %v4604_v40, %v1645_v18  ;;  %v1647_v19 = vpop.f32.mrb[13].mxu0  ;;  %v6941_v63 = vpack.c.bf16 %v2120_v1, %v2119_v62  ;;  %5542 = vmatpush3.bf16.msra.mxu0 %v5539_v37  ;;  %v4666_v1 = vld [vmem:[%s7553_s1 + $0x118] sm:$0xff]  ;;  %v4667_v18 = vld [vmem:[%s7553_s1 + $0x120] sm:$0xff]  ;;  %v4685_v37 = vld [vmem:[%s7553_s1 + $0x170] sm:$0xff] }
 0x133   : > { %v1649_v20 = vpop.f32.mrb[14].mxu0 }
 0x134   : > { %v2113_v21 = vadd.f32 %v4606_v43, %v2097_v59  ;;  %v2098_v22 = vmul.f32 %v4604_v40, %v1649_v20  ;;  %v1651_v13 = vpop.f32.mrb[15].mxu0  ;;  %v1854_v44 = vpop.f32.mrb[8].mxu1 }
 0x135   : > { %v6943_v23 = vpack.c.bf16 %v1651_v13, %v1647_v19  ;;  %v1856_v48 = vpop.f32.mrb[9].mxu1  ;;  %v4668_v19 = vld [vmem:[%s7553_s1 + $0x128] sm:$0xff] }
 0x136   : > { %v2121_v24 = vmax.f32 %v2113_v21, 0.0  ;;  %v2114_v25 = vadd.f32 %v4606_v43, %v2098_v22  ;;  %v1858_v50 = vpop.f32.mrb[10].mxu1  ;;  %v4669_v21 = vld [vmem:[%s7553_s1 + $0x130] sm:$0xff] }
 0x137   : > { %v5543_v53 = vpack.c.bf16 %v1858_v50, %v1854_v44  ;;  %v1860_v54 = vpop.f32.mrb[11].mxu1  ;;  %v2127_v44 = vld [vmem:[%s7553_s1 + $0x20] sm:$0xff] }
 0x138   : > { %v2122_v26 = vmax.f32 %v2114_v25, 0.0  ;;  %v5559_v56 = vpack.c.bf16 %v1860_v54, %v1856_v48  ;;  %v2130_v48 = vld [vmem:[%s7553_s1 + $0x38] sm:$0xff] }
 0x139   : > { %5544 = vmatprep.subr.bf16.mxu0 %v5543_v53 }
 0x13a   : > { %v6948_v28 = vpack.c.bf16 %v2122_v26, %v2121_v24  ;;  %5546 = vmatpush3.bf16.msra.mxu0 %v5543_v53  ;;  %v4670_v26 = vld [vmem:[%s7553_s1 + $0x138] sm:$0xff]  ;;  %v4632_v53 = vld [vmem:[%s7553_s1 + $0x88] sm:$0xff] }
 0x13c   : > { %v1864_v45 = vpop.f32.mrb[12].mxu1 }
 0x13d   : > { %v1866_v2 = vpop.f32.mrb[13].mxu1 }
 0x13e   : > { %v1868_v5 = vpop.f32.mrb[14].mxu1 }
 0x13f   : > { %v5547_v6 = vpack.c.bf16 %v1868_v5, %v1864_v45  ;;  %v1870_v7 = vpop.f32.mrb[15].mxu1 }
 0x140   : > { %v5563_v9 = vpack.c.bf16 %v1870_v7, %v1866_v2  ;;  %v7127_v2 = vld [vmem:[%s7557_s5 + $0x4] ss:$0 sm:$0xff] }
 0x141   : > { %5548 = vmatprep.subr.bf16.mxu0 %v5547_v6  ;;  %v4635_v7 = vld [vmem:[%s7553_s1 + $0xa0] sm:$0xff] }
 0x142   : > { %5550 = vmatpush3.bf16.msra.mxu0 %v5547_v6 }
 0x143   : > { %5552 = vmatprep.subr.bf16.mxu0 %v5551_v33 }
 0x145   : > { %5232 = vmatmul.mubr.msk.f32.vlgmr.msra.gmra.mrb[72].mxu0 %vm2140_vm0, %v4664_v55 }
 0x146   : > { %5554 = vmatpush3.bf16.msra.mxu0 %v5551_v33  ;;  %5234 = vmatprep.mubr.msk.f32.mxu0 %vm2140_vm0, %v4665_v12  ;;  %v4611_v33 = vld [vmem:[%s7553_s1 + $0x60] sm:$0xff] }
 0x147   : > { %5556 = vmatprep.subr.bf16.mxu0 %v5555_v39 }
 0x149   : > { %5235 = vmatmul.mubr.msk.f32.gmra.mrb[74].mxu0 %vm2140_vm0, %v4666_v1 }
 0x14a   : > { %5558 = vmatpush3.bf16.msra.mxu0 %v5555_v39  ;;  %5237 = vmatprep.mubr.msk.f32.mxu0 %vm2140_vm0, %v4667_v18  ;;  %v2123_v39 = vld [vmem:[%s7553_s1] sm:$0xff]  ;;  %v4636_v18 = vld [vmem:[%s7553_s1 + $0xa8] sm:$0xff] }
 0x14b   : > { %5560 = vmatprep.subr.bf16.mxu0 %v5559_v56 }
 0x14d   : > { %5238 = vmatmul.mubr.msk.f32.gmra.mrb[76].mxu0 %vm2140_vm0, %v4668_v19 }
 0x14e   : > { %5562 = vmatpush3.bf16.msra.mxu0 %v5559_v56  ;;  %5240 = vmatprep.mubr.msk.f32.mxu0 %vm2140_vm0, %v4669_v21  ;;  %v4633_v56 = vld [vmem:[%s7553_s1 + $0x90] sm:$0xff] }
 0x14f   : > { %5564 = vmatprep.subr.bf16.mxu0 %v5563_v9 }
 0x151   : > { %5241 = vmatmul.mubr.msk.f32.gmra.mrb[78].mxu0 %vm2140_vm0, %v4670_v26 }
 0x152   : > { %5566 = vmatpush3.bf16.msra.mxu0 %v5563_v9  ;;  %5259 = vmatprep.mubr.msk.f32.mxu0 %vm2140_vm0, %v4679_v27  ;;  %v7137_v9 = vld [vmem:[%s7557_s5 + $0x6] ss:$0 sm:$0xff] }
 0x155   : > { %5260 = vmatmul.mubr.msk.f32.vlgmr.msra.gmra.mrb[72].mxu0 %vm2140_vm0, %v4680_v8 }
 0x156   : > { %5262 = vmatprep.mubr.msk.f32.mxu0 %vm2140_vm0, %v4681_v31 }
 0x159   : > { %v1688_v40 = vpop.f32.mrb[16].mxu0 }
 0x15a   : > { %v1690_v41 = vpop.f32.mrb[17].mxu0 }
 0x15b   : > { %v1692_v43 = vpop.f32.mrb[18].mxu0 }
 0x15c   : > { %v5471_v46 = vpack.c.bf16 %v1692_v43, %v1688_v40  ;;  %v1694_v47 = vpop.f32.mrb[19].mxu0  ;;  %v4695_v40 = vld [vmem:[%s7553_s1 + $0x180] sm:$0xff]  ;;  %v2125_v43 = vld [vmem:[%s7553_s1 + $0x10] sm:$0xff] }
 0x15d   : > { %v6951_v49 = vpack.c.bf16 %v1694_v47, %v1690_v41  ;;  %v2124_v41 = vld [vmem:[%s7553_s1 + $0x8] sm:$0xff]  ;;  %v2129_v47 = vld [vmem:[%s7553_s1 + $0x30] sm:$0xff] }
 0x15e   : > { %5472 = vmatprep.subr.bf16.mxu1 %v5471_v46 }
 0x15f   : > { %5474 = vmatpush3.bf16.msra.mxu1 %v5471_v46  ;;  %v2128_v46 = vld [vmem:[%s7553_s1 + $0x28] sm:$0xff] }
 0x161   : > { %v1698_v57 = vpop.f32.mrb[20].mxu0 }
 0x162   : > { %v1700_v42 = vpop.f32.mrb[21].mxu0 }
 0x163   : > { %v1702_v58 = vpop.f32.mrb[22].mxu0 }
 0x164   : > { %v5475_v61 = vpack.c.bf16 %v1702_v58, %v1698_v57  ;;  %v1704_v0 = vpop.f32.mrb[23].mxu0  ;;  %v7101_v50 = vpop.f32.mrb[16].mxu1 }
 0x165   : > { %v6953_v3 = vpack.c.bf16 %v1704_v0, %v1700_v42  ;;  %v7108_v54 = vpop.f32.mrb[17].mxu1  ;;  %v4634_v0 = vld [vmem:[%s7553_s1 + $0x98] sm:$0xff] }
 0x166   : > { %5476 = vmatprep.subr.bf16.mxu1 %v5475_v61  ;;  %v7113_v57 = vpop.f32.mrb[18].mxu1 }
 0x167   : > { %5478 = vmatpush3.bf16.msra.mxu1 %v5475_v61  ;;  %v7115_v58 = vpop.f32.mrb[19].mxu1 }
 0x169   : > { %v1708_v52 = vpop.f32.mrb[24].mxu0 }
 0x16a   : > { %v1710_v11 = vpop.f32.mrb[25].mxu0 }
 0x16b   : > { %v1712_v14 = vpop.f32.mrb[26].mxu0 }
 0x16c   : > { %v5479_v15 = vpack.c.bf16 %v1712_v14, %v1708_v52  ;;  %v1714_v62 = vpop.f32.mrb[27].mxu0 }
 0x16d   : > { %v6962_v17 = vpack.c.bf16 %v1714_v62, %v1710_v11  ;;  %v7143_v11 = vld [vmem:[%s7557_s5 + $0x5] ss:$0 sm:$0xff] }
 0x16e   : > { %5480 = vmatprep.subr.bf16.mxu1 %v5479_v15 }
 0x16f   : > { %5482 = vmatpush3.bf16.msra.mxu1 %v5479_v15  ;;  %v7150_v15 = vld [vmem:[%s7557_s5 + $0x7] ss:$0 sm:$0xff] }
 0x171   : > { %v1718_v59 = vpop.f32.mrb[28].mxu0 }
 0x172   : > { %v1720_v20 = vpop.f32.mrb[29].mxu0 }
 0x173   : > { %v1722_v22 = vpop.f32.mrb[30].mxu0 }
 0x174   : > { %v5483_v13 = vpack.c.bf16 %v1722_v22, %v1718_v59  ;;  %v1724_v24 = vpop.f32.mrb[31].mxu0 }
 0x175   : > { %v6980_v25 = vpack.c.bf16 %v1724_v24, %v1720_v20  ;;  %v4637_v20 = vld [vmem:[%s7553_s1 + $0xb0] sm:$0xff] }
 0x176   : > { %5484 = vmatprep.subr.bf16.mxu1 %v5483_v13 }
 0x177   : > { %5486 = vmatpush3.bf16.msra.mxu1 %v5483_v13 }
 0x178   : > { %5488 = vmatprep.subr.bf16.mxu1 %v6924_v51 }
 0x17a   : > { %5120 = vmatmul.mubr.msk.f32.vlgmr.msra.gmra.mrb[40].mxu1 %vm2140_vm0, %v4608_v29 }
 0x17b   : > { %5490 = vmatpush3.bf16.msra.mxu1 %v6924_v51  ;;  %5122 = vmatprep.mubr.msk.f32.mxu1 %vm2140_vm0, %v4609_v30  ;;  %v4682_v51 = vld [vmem:[%s7553_s1 + $0x158] sm:$0xff] }
 0x17c   : > { %5492 = vmatprep.subr.bf16.mxu1 %v6933_v4  ;;  %5263 = vmatmul.mubr.msk.f32.gmra.mrb[74].mxu0 %vm2140_vm0, %v4682_v51  ;;  %v4638_v30 = vld [vmem:[%s7553_s1 + $0xb8] sm:$0xff]  ;;  %v4647_v51 = vld [vmem:[%s7553_s1 + $0xc0] sm:$0xff] }
 0x17d   : > { %5265 = vmatprep.mubr.msk.f32.mxu0 %vm2140_vm0, %v4683_v34 }
 0x17e   : > { %5123 = vmatmul.mubr.msk.f32.gmra.mrb[42].mxu1 %vm2140_vm0, %v4610_v32 }
 0x17f   : > { %5494 = vmatpush3.bf16.msra.mxu1 %v6933_v4  ;;  %5125 = vmatprep.mubr.msk.f32.mxu1 %vm2140_vm0, %v4611_v33  ;;  %v4684_v4 = vld [vmem:[%s7553_s1 + $0x168] sm:$0xff] }
 0x180   : > { %5496 = vmatprep.subr.bf16.mxu1 %v6939_v16  ;;  %5266 = vmatmul.mubr.msk.f32.gmra.mrb[76].mxu0 %vm2140_vm0, %v4684_v4 }
 0x181   : > { %5268 = vmatprep.mubr.msk.f32.mxu0 %vm2140_vm0, %v4685_v37 }
 0x182   : > { %5126 = vmatmul.mubr.msk.f32.gmra.mrb[44].mxu1 %vm2140_vm0, %v4612_v35 }
 0x183   : > { %5498 = vmatpush3.bf16.msra.mxu1 %v6939_v16  ;;  %5128 = vmatprep.mubr.msk.f32.mxu1 %vm2140_vm0, %v4613_v36  ;;  %v4686_v16 = vld [vmem:[%s7553_s1 + $0x178] sm:$0xff] }
 0x184   : > { %5500 = vmatprep.subr.bf16.mxu1 %v6943_v23  ;;  %5269 = vmatmul.mubr.msk.f32.gmra.mrb[78].mxu0 %vm2140_vm0, %v4686_v16 }
 0x185   : > { %5287 = vmatprep.mubr.msk.f32.mxu0 %vm2140_vm0, %v4695_v40 }
 0x186   : > { %5129 = vmatmul.mubr.msk.f32.gmra.mrb[46].mxu1 %vm2140_vm0, %v4614_v38 }
 0x187   : > { %5502 = vmatpush3.bf16.msra.mxu1 %v6943_v23  ;;  %5147 = vmatprep.mubr.msk.f32.mxu1 %vm2140_vm0, %v2123_v39  ;;  %v2126_v23 = vld [vmem:[%s7553_s1 + $0x18] sm:$0xff] }
 0x188   : > { %5504 = vmatprep.subr.bf16.mxu1 %v6951_v49 }
 0x18a   : > { %5148 = vmatmul.mubr.msk.f32.vlgmr.msra.gmra.mrb[40].mxu1 %vm2140_vm0, %v2124_v41 }
 0x18b   : > { %5506 = vmatpush3.bf16.msra.mxu1 %v6951_v49  ;;  %5150 = vmatprep.mubr.msk.f32.mxu1 %vm2140_vm0, %v2125_v43  ;;  %v4631_v49 = vld [vmem:[%s7553_s1 + $0x80] sm:$0xff] }
 0x18c   : > { %5508 = vmatprep.subr.bf16.mxu1 %v6953_v3 }
 0x18e   : > { %5151 = vmatmul.mubr.msk.f32.gmra.mrb[42].mxu1 %vm2140_vm0, %v2126_v23 }
 0x18f   : > { %5510 = vmatpush3.bf16.msra.mxu1 %v6953_v3  ;;  %5153 = vmatprep.mubr.msk.f32.mxu1 %vm2140_vm0, %v2127_v44  ;;  %v1990_v3 = vpop.f32.mrb[20].mxu1 }
 0x190   : > { %5512 = vmatprep.subr.bf16.mxu1 %v6962_v17  ;;  %v3341_v52 = vmul.f32 %v7127_v2, %v1990_v3  ;;  %v1992_v55 = vpop.f32.mrb[21].mxu1 }
 0x191   : > { %v3389_v12 = vmul.f32 %v7137_v9, %v1992_v55  ;;  %v1994_v14 = vpop.f32.mrb[22].mxu1  ;;  %v4649_v55 = vld [vmem:[%s7553_s1 + $0xd0] sm:$0xff] }
 0x192   : > { %5154 = vmatmul.mubr.msk.f32.gmra.mrb[44].mxu1 %vm2140_vm0, %v2128_v46  ;;  %v3357_v62 = vadd.f32 %v7143_v11, %v3341_v52  ;;  %v1996_v1 = vpop.f32.mrb[23].mxu1 }
 0x193   : > { %5514 = vmatpush3.bf16.msra.mxu1 %v6962_v17  ;;  %5156 = vmatprep.mubr.msk.f32.mxu1 %vm2140_vm0, %v2129_v47  ;;  %v3342_v17 = vmul.f32 %v7127_v2, %v1994_v14  ;;  %v3405_v59 = vadd.f32 %v7150_v15, %v3389_v12  ;;  %v3390_v19 = vmul.f32 %v7137_v9, %v1996_v1  ;;  %v7172_v31 = vpop.f32.mrb[24].mxu1  ;;  %v4650_v12 = vld [vmem:[%s7553_s1 + $0xd8] sm:$0xff] }
 0x194   : > { %5516 = vmatprep.subr.bf16.mxu1 %v6980_v25  ;;  %v3365_v21 = vmax.f32 %v3357_v62, 0.0  ;;  %v7181_v35 = vpop.f32.mrb[25].mxu1  ;;  %v4651_v62 = vld [vmem:[%s7553_s1 + $0xe0] sm:$0xff] }
 0x195   : > { %v3358_v22 = vadd.f32 %v7143_v11, %v3342_v17  ;;  %v3413_v24 = vmax.f32 %v3405_v59, 0.0  ;;  %v7185_v4 = vpop.f32.mrb[26].mxu1 }
 0x196   : > { %5157 = vmatmul.mubr.msk.f32.gmra.mrb[46].mxu1 %vm2140_vm0, %v2130_v48  ;;  %v7188_v37 = vpop.f32.mrb[27].mxu1 }
 0x197   : > { %5518 = vmatpush3.bf16.msra.mxu1 %v6980_v25  ;;  %5175 = vmatprep.mubr.msk.f32.mxu1 %vm2140_vm0, %v4631_v49  ;;  %v3406_v25 = vadd.f32 %v7150_v15, %v3390_v19  ;;  %v3366_v27 = vmax.f32 %v3358_v22, 0.0  ;;  %v7193_v40 = vpop.f32.mrb[28].mxu1  ;;  %v4652_v19 = vld [vmem:[%s7553_s1 + $0xe8] sm:$0xff]  ;;  %v4654_v22 = vld [vmem:[%s7553_s1 + $0xf8] sm:$0xff] }
 0x198   : > { %v7197_v23 = vpop.f32.mrb[29].mxu1 }
 0x199   : > { %v1761_v42 = vpop.f32.mrb[32].mxu0  ;;  %v3414_v8 = vmax.f32 %v3406_v25, 0.0  ;;  %v7179_v34 = vpack.c.bf16 %v3366_v27, %v3365_v21  ;;  %v7199_v44 = vpop.f32.mrb[30].mxu1  ;;  %v4653_v21 = vld [vmem:[%s7553_s1 + $0xf0] sm:$0xff] }
 0x19a   : > { %v7117_v45 = vpop.f32.mrb[33].mxu0  ;;  %5176 = vmatmul.mubr.msk.f32.vlgmr.msra.gmra.mrb[40].mxu1 %vm2140_vm0, %v4632_v53  ;;  %v7201_v46 = vpop.f32.mrb[31].mxu1 }
 0x19b   : > { %v1765_v61 = vpop.f32.mrb[34].mxu0  ;;  %5178 = vmatprep.mubr.msk.f32.mxu1 %vm2140_vm0, %v4633_v56  ;;  %v7183_v36 = vpack.c.bf16 %v3414_v8, %v3413_v24 }
 0x19c   : > { %v5519_v5 = vpack.c.bf16 %v1765_v61, %v1761_v42  ;;  %v7129_v6 = vpop.f32.mrb[35].mxu0 }
 0x19e   : > { %5520 = vmatprep.subr.bf16.mxu1 %v5519_v5  ;;  %5179 = vmatmul.mubr.msk.f32.gmra.mrb[42].mxu1 %vm2140_vm0, %v4634_v0 }
 0x19f   : > { %5522 = vmatpush3.bf16.msra.mxu1 %v5519_v5  ;;  %5181 = vmatprep.mubr.msk.f32.mxu1 %vm2140_vm0, %v4635_v7  ;;  %v4648_v7 = vld [vmem:[%s7553_s1 + $0xc8] sm:$0xff] }
 0x1a1   : > { %v1771_v13 = vpop.f32.mrb[36].mxu0 }
 0x1a2   : > { %v7165_v26 = vpop.f32.mrb[37].mxu0  ;;  %5182 = vmatmul.mubr.msk.f32.gmra.mrb[44].mxu1 %vm2140_vm0, %v4636_v18 }
 0x1a3   : > { %v1775_v29 = vpop.f32.mrb[38].mxu0  ;;  %5184 = vmatprep.mubr.msk.f32.mxu1 %vm2140_vm0, %v4637_v20 }
 0x1a4   : > { %v5523_v32 = vpack.c.bf16 %v1775_v29, %v1771_v13  ;;  %v7174_v33 = vpop.f32.mrb[39].mxu0 }
 0x1a6   : > { %5524 = vmatprep.subr.bf16.mxu1 %v5523_v32  ;;  %5185 = vmatmul.mubr.msk.f32.gmra.mrb[46].mxu1 %vm2140_vm0, %v4638_v30 }
 0x1a7   : > { %5526 = vmatpush3.bf16.msra.mxu1 %v5523_v32  ;;  %5203 = vmatprep.mubr.msk.f32.mxu1 %vm2140_vm0, %v4647_v51 }
 0x1a9   : > { %v1781_v38 = vpop.f32.mrb[40].mxu0 }
 0x1aa   : > { %v7191_v39 = vpop.f32.mrb[41].mxu0 }
 0x1ab   : > { %v1785_v16 = vpop.f32.mrb[42].mxu0 }
 0x1ac   : > { %v5527_v41 = vpack.c.bf16 %v1785_v16, %v1781_v38  ;;  %v7195_v43 = vpop.f32.mrb[43].mxu0 }
 0x1ae   : > { %5528 = vmatprep.subr.bf16.mxu1 %v5527_v41 }
 0x1af   : > { %5530 = vmatpush3.bf16.msra.mxu1 %v5527_v41 }
 0x1b0   : > { %v4891_v53 = vpop.f32.mrb[32].mxu1 }
 0x1b1   : > { %v1791_v47 = vpop.f32.mrb[44].mxu0  ;;  %v4892_v61 = vpop.f32.mrb[33].mxu1 }
 0x1b2   : > { %v7203_v48 = vpop.f32.mrb[45].mxu0  ;;  %v7207_v0 = vadd.f32 %v4892_v61, %v4891_v53  ;;  %v4894_v3 = vpop.f32.mrb[34].mxu1 }
 0x1b3   : > { %v1795_v49 = vpop.f32.mrb[46].mxu0  ;;  %v4895_v5 = vpop.f32.mrb[35].mxu1 }
 0x1b4   : > { %v5531_v56 = vpack.c.bf16 %v1795_v49, %v1791_v47  ;;  %v7205_v42 = vpop.f32.mrb[47].mxu0  ;;  %v7212_v52 = vadd.f32 %v4895_v5, %v4894_v3 }
 0x1b6   : > { %5532 = vmatprep.subr.bf16.mxu1 %v5531_v56 }
 0x1b7   : > { %5534 = vmatpush3.bf16.msra.mxu1 %v5531_v56 }
 0x1b8   : > { %v4897_v14 = vpop.f32.mrb[36].mxu1 }
 0x1b9   : > { %v4898_v17 = vpop.f32.mrb[37].mxu1 }
 0x1ba   : > { %5204 = vmatmul.mubr.msk.f32.vlgmr.msra.gmra.mrb[40].mxu1 %vm2140_vm0, %v4648_v7  ;;  %v7225_v1 = vadd.f32 %v4898_v17, %v4897_v14  ;;  %v4900_v18 = vpop.f32.mrb[38].mxu1  ;;  %v3339_v17 = vmul.f32 %v7127_v2, %v7101_v50 }
 0x1bb   : > { %5206 = vmatprep.mubr.msk.f32.mxu1 %vm2140_vm0, %v4649_v55  ;;  %v4901_v59 = vpop.f32.mrb[39].mxu1 }
 0x1bc   : > { %v7232_v20 = vadd.f32 %v4901_v59, %v4900_v18  ;;  %v3387_v18 = vmul.f32 %v7137_v9, %v7108_v54  ;;  %v4696_v59 = vld [vmem:[%s7553_s1 + $0x188] sm:$0xff]  ;;  %v3355_v54 = vadd.f32 %v7143_v11, %v3339_v17 }
 0x1be   : > { %5207 = vmatmul.mubr.msk.f32.gmra.mrb[42].mxu1 %vm2140_vm0, %v4650_v12 }
 0x1bf   : > { %5209 = vmatprep.mubr.msk.f32.mxu1 %vm2140_vm0, %v4651_v62 }
 0x1c2   : > { %5210 = vmatmul.mubr.msk.f32.gmra.mrb[44].mxu1 %vm2140_vm0, %v4652_v19  ;;  %v3340_v19 = vmul.f32 %v7127_v2, %v7113_v57  ;;  %v4698_v57 = vld [vmem:[%s7553_s1 + $0x198] sm:$0xff] }
 0x1c3   : > { %5212 = vmatprep.mubr.msk.f32.mxu1 %vm2140_vm0, %v4653_v21  ;;  %v3388_v21 = vmul.f32 %v7137_v9, %v7115_v58 }
 0x1c4   : > { %v3356_v58 = vadd.f32 %v7143_v11, %v3340_v19  ;;  %v3345_v19 = vmul.f32 %v7127_v2, %v7193_v40 }
 0x1c6   : > { %5213 = vmatmul.mubr.msk.f32.gmra.mrb[46].mxu1 %vm2140_vm0, %v4654_v22  ;;  %v4697_v22 = vld [vmem:[%s7553_s1 + $0x190] sm:$0xff] }
 0x1d9   : > { %v1907_v13 = vpop.f32.mrb[48].mxu0 }
 0x1da   : > { %v1909_v24 = vpop.f32.mrb[49].mxu0 }
 0x1db   : > { %v1911_v25 = vpop.f32.mrb[50].mxu0 }
 0x1dc   : > { %v5567_v27 = vpack.c.bf16 %v1911_v25, %v1907_v13  ;;  %v1913_v29 = vpop.f32.mrb[51].mxu0  ;;  %v3403_v13 = vadd.f32 %v7150_v15, %v3387_v18  ;;  %v3404_v25 = vadd.f32 %v7150_v15, %v3388_v21  ;;  %v3393_v21 = vmul.f32 %v7137_v9, %v7197_v23  ;;  %v4717_v23 = vld [vmem:[%s7553_s1 + $0x1f0] sm:$0xff] }
 0x1dd   : > { %v5583_v30 = vpack.c.bf16 %v1913_v29, %v1909_v24 }
 0x1de   : > { %5568 = vmatprep.subr.bf16.mxu0 %v5567_v27 }
 0x1df   : > { %5570 = vmatpush3.bf16.msra.mxu0 %v5567_v27 }
 0x1e1   : > { %v1917_v8 = vpop.f32.mrb[52].mxu0 }
 0x1e2   : > { %v1919_v32 = vpop.f32.mrb[53].mxu0 }
 0x1e3   : > { %v1921_v51 = vpop.f32.mrb[54].mxu0 }
 0x1e4   : > { %v5571_v38 = vpack.c.bf16 %v1921_v51, %v1917_v8  ;;  %v1923_v16 = vpop.f32.mrb[55].mxu0  ;;  %v4699_v8 = vld [vmem:[%s7553_s1 + $0x1a0] sm:$0xff]  ;;  %v3411_v51 = vmax.f32 %v3403_v13, 0.0 }
 0x1e5   : > { %v5587_v41 = vpack.c.bf16 %v1923_v16, %v1919_v32  ;;  %v3363_v32 = vmax.f32 %v3355_v54, 0.0  ;;  %v3412_v16 = vmax.f32 %v3404_v25, 0.0  ;;  %v4716_v54 = vld [vmem:[%s7553_s1 + $0x1e8] sm:$0xff] }
 0x1e6   : > { %5572 = vmatprep.subr.bf16.mxu0 %v5571_v38 }
 0x1e7   : > { %5574 = vmatpush3.bf16.msra.mxu0 %v5571_v38  ;;  %v3364_v38 = vmax.f32 %v3356_v58, 0.0  ;;  %v3394_v58 = vmul.f32 %v7137_v9, %v7201_v46 }
 0x1e9   : > { %v1927_v47 = vpop.f32.mrb[56].mxu0  ;;  %v3410_v46 = vadd.f32 %v7150_v15, %v3394_v58 }
 0x1ea   : > { %v1929_v49 = vpop.f32.mrb[57].mxu0 }
 0x1eb   : > { %v1931_v53 = vpop.f32.mrb[58].mxu0 }
 0x1ec   : > { %v5575_v56 = vpack.c.bf16 %v1931_v53, %v1927_v47  ;;  %v1933_v61 = vpop.f32.mrb[59].mxu0  ;;  %v4701_v47 = vld [vmem:[%s7553_s1 + $0x1b0] sm:$0xff]  ;;  %v7284_v53 = vpack.c.bf16 %v3412_v16, %v3411_v51  ;;  %v3409_v51 = vadd.f32 %v7150_v15, %v3393_v21 }
 0x1ed   : > { %v5591_v3 = vpack.c.bf16 %v1933_v61, %v1929_v49  ;;  %v7282_v49 = vpack.c.bf16 %v3364_v38, %v3363_v32  ;;  %v3343_v61 = vmul.f32 %v7127_v2, %v7172_v31  ;;  %v4713_v31 = vld [vmem:[%s7553_s1 + $0x1d0] sm:$0xff]  ;;  %v3361_v32 = vadd.f32 %v7143_v11, %v3345_v19 }
 0x1ee   : > { %5576 = vmatprep.subr.bf16.mxu0 %v5575_v56 }
 0x1ef   : > { %5578 = vmatpush3.bf16.msra.mxu0 %v5575_v56  ;;  %v4711_v56 = vld [vmem:[%s7553_s1 + $0x1c0] sm:$0xff] }
 0x1f1   : > { %v1937_v5 = vpop.f32.mrb[60].mxu0 }
 0x1f2   : > { %v1939_v7 = vpop.f32.mrb[61].mxu0 }
 0x1f3   : > { %v1941_v55 = vpop.f32.mrb[62].mxu0 }
 0x1f4   : > { %v5579_v12 = vpack.c.bf16 %v1941_v55, %v1937_v5  ;;  %v1943_v14 = vpop.f32.mrb[63].mxu0  ;;  %v4712_v5 = vld [vmem:[%s7553_s1 + $0x1c8] sm:$0xff]  ;;  %v3392_v55 = vmul.f32 %v7137_v9, %v7188_v37 }
 0x1f5   : > { %v5595_v62 = vpack.c.bf16 %v1943_v14, %v1939_v7  ;;  %v3344_v7 = vmul.f32 %v7127_v2, %v7185_v4  ;;  %v4714_v14 = vld [vmem:[%s7553_s1 + $0x1d8] sm:$0xff] }
 0x1f6   : > { %5580 = vmatprep.subr.bf16.mxu0 %v5579_v12  ;;  %v3408_v37 = vadd.f32 %v7150_v15, %v3392_v55 }
 0x1f7   : > { %5582 = vmatpush3.bf16.msra.mxu0 %v5579_v12  ;;  %v3359_v12 = vadd.f32 %v7143_v11, %v3343_v61  ;;  %v3360_v4 = vadd.f32 %v7143_v11, %v3344_v7  ;;  %v3417_v61 = vmax.f32 %v3409_v51, 0.0 }
 0x1f8   : > { %5584 = vmatprep.subr.bf16.mxu0 %v5583_v30 }
 0x1f9   : > { %v4879_v50 = vpop.f32.mrb[64].mxu0  ;;  %v3367_v17 = vmax.f32 %v3359_v12, 0.0  ;;  %v3368_v13 = vmax.f32 %v3360_v4, 0.0  ;;  %v6034_v4 = vld [vmem:[%s7555_s3 + $0x78] sm:$0xff]  }
 0x1fa   : > { %5288 = vmatmul.mubr.msk.f32.vlgmr.msra.gmra.mrb[72].mxu0 %vm2140_vm0, %v4696_v59  ;;  %v4880_v24 = vpop.f32.mrb[65].mxu0 }
 0x1fb   : > { %5586 = vmatpush3.bf16.msra.mxu0 %v5583_v30  ;;  %5290 = vmatprep.mubr.msk.f32.mxu0 %vm2140_vm0, %v4697_v22  ;;  %v4881_v27 = vadd.f32 %v4880_v24, %v4879_v50  ;;  %v4882_v29 = vpop.f32.mrb[66].mxu0  ;;  %v4700_v30 = vld [vmem:[%s7553_s1 + $0x1a8] sm:$0xff]  ;;  %v3416_v24 = vmax.f32 %v3408_v37, 0.0  ;;  %v6035_v37 = vld [vmem:[%s7555_s3] sm:$0xff]  }
 0x1fc   : > { %5588 = vmatprep.subr.bf16.mxu0 %v5587_v41  ;;  %v4883_v18 = vpop.f32.mrb[67].mxu0 }
 0x1fd   : > { %v4884_v22 = vadd.f32 %v4883_v18, %v4882_v29 }
 0x1fe   : > { %5291 = vmatmul.mubr.msk.f32.gmra.mrb[74].mxu0 %vm2140_vm0, %v4698_v57  ;;  %v3346_v57 = vmul.f32 %v7127_v2, %v7199_v44 }
 0x1ff   : > { %5590 = vmatpush3.bf16.msra.mxu0 %v5587_v41  ;;  %5293 = vmatprep.mubr.msk.f32.mxu0 %vm2140_vm0, %v4699_v8  ;;  %v4702_v41 = vld [vmem:[%s7553_s1 + $0x1b8] sm:$0xff]  ;;  %v3419_v25 = vadd.f32 %v4884_v22, %v4881_v27  ;;  %v7342_v27 = vpack.c.bf16 %v3368_v13, %v3367_v17 }
 0x200   : > { %5592 = vmatprep.subr.bf16.mxu0 %v5591_v3  ;;  %v3362_v44 = vadd.f32 %v7143_v11, %v3346_v57  ;;  %v6027_v11 = vld [vmem:[%s7555_s3 + $0x40] sm:$0xff]  }
 0x201   : > { %v4885_v50 = vpop.f32.mrb[68].mxu0  ;;  %5327 = vmatprep.subr.bf16.mxu1 %v6027_v11 }
 0x202   : > { %5294 = vmatmul.mubr.msk.f32.gmra.mrb[76].mxu0 %vm2140_vm0, %v4700_v30  ;;  %v4886_v40 = vpop.f32.mrb[69].mxu0  ;;  %5328 = vmatpush3.bf16.msra.mxu1 %v6027_v11 }
 0x203   : > { %5594 = vmatpush3.bf16.msra.mxu0 %v5591_v3  ;;  %5296 = vmatprep.mubr.msk.f32.mxu0 %vm2140_vm0, %v4701_v47  ;;  %v3391_v3 = vmul.f32 %v7137_v9, %v7181_v35  ;;  %v4887_v29 = vadd.f32 %v4886_v40, %v4885_v50  ;;  %v4888_v8 = vpop.f32.mrb[70].mxu0  ;;  %v4718_v9 = vld [vmem:[%s7553_s1 + $0x1f8] sm:$0xff] }
 0x204   : > { %5596 = vmatprep.subr.bf16.mxu0 %v5595_v62  ;;  %v4889_v30 = vpop.f32.mrb[71].mxu0 }
 0x205   : > { %v3407_v35 = vadd.f32 %v7150_v15, %v3391_v3  ;;  %v3420_v38 = vadd.f32 %v4887_v29, %v3419_v25  ;;  %v4890_v2 = vadd.f32 %v4889_v30, %v4888_v8  ;;  %v3370_v3 = vmax.f32 %v3362_v44, 0.0  ;;  %v6028_v15 = vld [vmem:[%s7555_s3 + $0x48] sm:$0xff]  }
 0x206   : > { %5297 = vmatmul.mubr.msk.f32.gmra.mrb[78].mxu0 %vm2140_vm0, %v4702_v41  ;;  %5329 = vmatprep.subr.bf16.mxu1 %v6028_v15 }
 0x207   : > { %5598 = vmatpush3.bf16.msra.mxu0 %v5595_v62  ;;  %5315 = vmatprep.mubr.msk.f32.mxu0 %vm2140_vm0, %v4711_v56  ;;  %v4715_v62 = vld [vmem:[%s7553_s1 + $0x1e0] sm:$0xff]  ;;  %v3415_v59 = vmax.f32 %v3407_v35, 0.0  ;;  %v3421_v47 = vadd.f32 %v4890_v2, %v3420_v38  ;;  %v3369_v56 = vmax.f32 %v3361_v32, 0.0  ;;  %v6032_v35 = vld [vmem:[%s7555_s3 + $0x68] sm:$0xff]  }
 0x208   : > { %5330 = vmatpush3.bf16.msra.mxu1 %v6028_v15 }
 0x209   : > { %v7344_v16 = vpack.c.bf16 %v3416_v24, %v3415_v59  ;;  %v3422_v41 = vadd.f32 %v7207_v0, %v3421_v47 }
 0x20a   : > { %5316 = vmatmul.mubr.msk.f32.vlgmr.msra.gmra.mrb[72].mxu0 %vm2140_vm0, %v4712_v5  ;;  %v3418_v5 = vmax.f32 %v3410_v46, 0.0 }
 0x20b   : > { %5318 = vmatprep.mubr.msk.f32.mxu0 %vm2140_vm0, %v4713_v31  ;;  %v3423_v7 = vadd.f32 %v7212_v52, %v3422_v41  ;;  %v7356_v31 = vpack.c.bf16 %v3370_v3, %v3369_v56  ;;  %v6029_v52 = vld [vmem:[%s7555_s3 + $0x50] sm:$0xff]  }
 0x20c   : > { %v7358_v12 = vpack.c.bf16 %v3418_v5, %v3417_v61  ;;  %5331 = vmatprep.subr.bf16.mxu1 %v6029_v52 }
 0x20d   : > { %v3424_v55 = vadd.f32 %v7225_v1, %v3423_v7  ;;  %v6030_v1 = vld [vmem:[%s7555_s3 + $0x58] sm:$0xff]   ;;  %5332 = vmatpush3.bf16.msra.mxu1 %v6029_v52 }
 0x20e   : > { %5319 = vmatmul.mubr.msk.f32.gmra.mrb[74].mxu0 %vm2140_vm0, %v4714_v14  ;;  %5333 = vmatprep.subr.bf16.mxu1 %v6030_v1  ;;  %v6033_v14 = vld [vmem:[%s7555_s3 + $0x70] sm:$0xff]  }
 0x20f   : > { %5321 = vmatprep.mubr.msk.f32.mxu0 %vm2140_vm0, %v4715_v62  ;;  %v7361_v0 = vadd.f32 %v7232_v20, %v3424_v55  ;;  %v6031_v20 = vld [vmem:[%s7555_s3 + $0x60] sm:$0xff]  }
 0x211   : > { %5334 = vmatpush3.bf16.msra.mxu1 %v6030_v1 }
 0x212   : > { %5322 = vmatmul.mubr.msk.f32.gmra.mrb[76].mxu0 %vm2140_vm0, %v4716_v54  ;;  %5335 = vmatprep.subr.bf16.mxu1 %v6031_v20 }
 0x213   : > { %5324 = vmatprep.mubr.msk.f32.mxu0 %vm2140_vm0, %v4717_v23 }
 0x215   : > { %5336 = vmatpush3.bf16.msra.mxu1 %v6031_v20 }
 0x216   : > { %5325 = vmatmul.mubr.msk.f32.gmra.mrb[78].mxu0 %vm2140_vm0, %v4718_v9  ;;  %5337 = vmatprep.subr.bf16.mxu1 %v6032_v35 }
 0x219   : > { %5338 = vmatpush3.bf16.msra.mxu1 %v6032_v35 }
 0x21a   : > { %5339 = vmatprep.subr.bf16.mxu1 %v6033_v14 }
 0x21d   : > { %5340 = vmatpush3.bf16.msra.mxu1 %v6033_v14 }
 0x21e   : > { %5341 = vmatprep.subr.bf16.mxu1 %v6034_v4 }
 0x221   : > { %5342 = vmatpush3.bf16.msra.mxu1 %v6034_v4 }
 0x222   : > { %5351 = vmatprep.subr.bf16.mxu1 %v6035_v37 }
 0x28d   : > { %v5205_v62 = vpop.f32.mrb[40].mxu1 }
 0x28e   : > { %v2692_v17 = vadd.f32 %v5205_v62, %v7129_v6  ;;  %v2644_v18 = vpop.f32.mrb[41].mxu1 }
 0x28f   : > { %v2691_v59 = vadd.f32 %v2644_v18, %v7117_v45  ;;  %v4728_v45 = vld [vmem:[%s7557_s5 + $0x2] ss:$0 sm:$0xff]  ;;  %v6036_v18 = vld [vmem:[%s7555_s3 + $0x8] sm:$0xff]  }
 0x291   : > { %v5208_v19 = vpop.f32.mrb[42].mxu1 }
 0x292   : > { %v2694_v21 = vadd.f32 %v5208_v19, %v7174_v33  ;;  %v2654_v22 = vpop.f32.mrb[43].mxu1 }
 0x293   : > { %v2693_v50 = vadd.f32 %v2654_v22, %v7165_v26  ;;  %v4730_v26 = vld [vmem:[%s7557_s5 + $0x3] ss:$0 sm:$0xff] }
 0x295   : > { %v5211_v54 = vpop.f32.mrb[44].mxu1 }
 0x296   : > { %v2696_v13 = vadd.f32 %v5211_v54, %v7195_v43  ;;  %v2664_v24 = vpop.f32.mrb[45].mxu1 }
 0x297   : > { %v2695_v57 = vadd.f32 %v2664_v24, %v7191_v39  ;;  %v6037_v24 = vld [vmem:[%s7555_s3 + $0x10] sm:$0xff]  }
 0x299   : > { %v5214_v58 = vpop.f32.mrb[46].mxu1 }
 0x29a   : > { %v2698_v40 = vadd.f32 %v5214_v58, %v7205_v42  ;;  %v2674_v23 = vpop.f32.mrb[47].mxu1 }
 0x29b   : > { %v2697_v6 = vadd.f32 %v2674_v23, %v7203_v48  ;;  %v6038_v23 = vld [vmem:[%s7555_s3 + $0x18] sm:$0xff]  }
 0x2dd   : > { %v5317_v25 = vpop.f32.mrb[72].mxu0 }
 0x2de   : > { %v5615_v33 = vadd.f32 %v5317_v25, %v2692_v17  ;;  %v3236_v29 = vpop.f32.mrb[73].mxu0  ;;  %v6039_v25 = vld [vmem:[%s7555_s3 + $0x20] sm:$0xff]  }
 0x2df   : > { %v5616_v43 = vadd.f32 %v3236_v29, %v2691_v59  ;;  %v6041_v29 = vld [vmem:[%s7555_s3 + $0x30] sm:$0xff]  }
 0x2e0   : > { %v3292_v8 = vmul.f32 %v5615_v33, %v4728_v45  ;;  %v6040_v33 = vld [vmem:[%s7555_s3 + $0x28] sm:$0xff]  }
 0x2e1   : > { %v3291_v39 = vmul.f32 %v5616_v43, %v4728_v45  ;;  %v5320_v30 = vpop.f32.mrb[74].mxu0  ;;  %v6042_v43 = vld [vmem:[%s7555_s3 + $0x38] sm:$0xff]  }
 0x2e2   : > { %v3308_v32 = vadd.f32 %v4730_v26, %v3292_v8  ;;  %v5617_v42 = vadd.f32 %v5320_v30, %v2694_v21  ;;  %v3246_v51 = vpop.f32.mrb[75].mxu0  ;;  %v6043_v8 = vld [vmem:[%s7555_s3 + $0x80] sm:$0xff]   ;;  %v6045_v30 = vld [vmem:[%s7555_s3 + $0x90] sm:$0xff]  }
 0x2e3   : > { %v3307_v38 = vadd.f32 %v4730_v26, %v3291_v39  ;;  %v5618_v48 = vadd.f32 %v3246_v51, %v2693_v50  ;;  %v6044_v39 = vld [vmem:[%s7555_s3 + $0x88] sm:$0xff]   ;;  %v3426_v51 = vrot.slane %v7361_v0, 4 }
 0x2e4   : > { %v3316_v2 = vmax.f32 %v3308_v32, 0.0  ;;  %v3294_v9 = vmul.f32 %v5617_v42, %v4728_v45  ;;  %v6046_v32 = vld [vmem:[%s7555_s3 + $0x98] sm:$0xff]   ;;  %v6051_v42 = vld [vmem:[%s7555_s3 + $0xc0] sm:$0xff]  }
 0x2e5   : > { %v3315_v44 = vmax.f32 %v3307_v38, 0.0  ;;  %v3293_v46 = vmul.f32 %v5618_v48, %v4728_v45  ;;  %v5323_v47 = vpop.f32.mrb[76].mxu0  ;;  %v6052_v38 = vld [vmem:[%s7555_s3 + $0xc8] sm:$0xff]   ;;  %v3427_v48 = vadd.f32 %v3426_v51, %v7361_v0 }
 0x2e6   : > { %v3310_v41 = vadd.f32 %v4730_v26, %v3294_v9  ;;  %v5619_v56 = vadd.f32 %v5323_v47, %v2696_v13  ;;  %v3256_v61 = vpop.f32.mrb[77].mxu0  ;;  %v6056_v0 = vld [vmem:[%s7555_s3 + $0xe8] sm:$0xff]  }
 0x2e7   : > { %v3309_v3 = vadd.f32 %v4730_v26, %v3293_v46  ;;  %v5620_v5 = vadd.f32 %v3256_v61, %v2695_v57  ;;  %v3465_v7 = vpack.c.bf16 %v3316_v2, %v3315_v44  ;;  %v6053_v2 = vld [vmem:[%s7555_s3 + $0xd0] sm:$0xff]   ;;  %v3428_v9 = vrot.slane %v3427_v48, 2  ;;  %v6054_v44 = vld [vmem:[%s7555_s3 + $0xd8] sm:$0xff]  }
 0x2e8   : > { %v3318_v55 = vmax.f32 %v3310_v41, 0.0  ;;  %v3296_v11 = vmul.f32 %v5619_v56, %v4728_v45  ;;  %v4739_v41 = vld [vmem:[%s7557_s5 + $0x8] sm:$0x1]  ;;  %v6058_v56 = vld [vmem:[%s7555_s3 + $0xf8] sm:$0xff]  }
 0x2e9   : > { %v3317_v15 = vmax.f32 %v3309_v3, 0.0  ;;  %v3295_v52 = vmul.f32 %v5620_v5, %v4728_v45  ;;  %v5326_v1 = vpop.f32.mrb[78].mxu0  ;;  %5343 = vmatprep.mubr.bf16.mxu1 %v3465_v7  ;;  %v3429_v46 = vadd.f32 %v3428_v9, %v3427_v48  ;;  %v3441_v3 = vlaneseq  ;;  %v4740_v5 = vld [vmem:[%s7557_s5 + $0x9] sm:$0x1]  ;;  %v6059_v7 = vld [vmem:[%s7555_s3 + $0x100] sm:$0xff]  }
 0x2ea   : > { %v3312_v20 = vadd.f32 %v4730_v26, %v3296_v11  ;;  %v5621_v35 = vadd.f32 %v5326_v1, %v2698_v40  ;;  %v3266_v14 = vpop.f32.mrb[79].mxu0 }
 0x2eb   : > { %v3466_v4 = vpack.c.bf16 %v3318_v55, %v3317_v15  ;;  %v3311_v62 = vadd.f32 %v4730_v26, %v3295_v52  ;;  %v5622_v17 = vadd.f32 %v3266_v14, %v2697_v6  ;;  %v6068_v6 = vld [vmem:[%s7556_s4 + $0x8] sm:$0xff]   ;;  %v3442_v11 = vshrl.u32 %v3441_v3, 7  ;;  %v6062_v14 = vld [vmem:[%s7555_s3 + $0x118] sm:$0xff]  }
 0x2ec   : > { %v3320_v59 = vmax.f32 %v3312_v20, 0.0  ;;  %v3298_v19 = vmul.f32 %v5621_v35, %v4728_v45  ;;  %v6060_v15 = vld [vmem:[%s7555_s3 + $0x108] sm:$0xff]   ;;  %v6061_v20 = vld [vmem:[%s7555_s3 + $0x110] sm:$0xff]  }
 0x2ed   : > { %v3319_v21 = vmax.f32 %v3311_v62, 0.0  ;;  %v3297_v22 = vmul.f32 %v5622_v17, %v4728_v45  ;;  %5344 = vmatmul.mubr.bf16.vlgmr.msra.gmra.mrb[48].mxu1 %v3466_v4  ;;  %v6069_v45 = vld [vmem:[%s7556_s4 + $0x10] sm:$0xff]   ;;  %v3443_v1 = vsub.s32 0, %v3442_v11  ;;  %v6072_v17 = vld [vmem:[%s7556_s4 + $0x28] sm:$0xff]  }
 0x2ee   : > { %v3314_v50 = vadd.f32 %v4730_v26, %v3298_v19  ;;  %5352 = vmatpush3.bf16.msra.mxu1 %v6035_v37  ;;  %v6067_v37 = vld [vmem:[%s7556_s4] sm:$0xff]   ;;  %v6065_v62 = vld [vmem:[%s7555_s3 + $0x130] sm:$0xff]   ;;  %v4846_v19 = vld [vmem:[%s7557_s5 + $0xa] ss:$0 sm:$0xff] }
 0x2ef   : > { %v3313_v54 = vadd.f32 %v4730_v26, %v3297_v22  ;;  %5353 = vmatprep.subr.bf16.mxu1 %v6036_v18  ;;  %v3467_v13 = vpack.c.bf16 %v3320_v59, %v3319_v21  ;;  %5447 = vmatprep.subr.bf16.mxu0 %v6067_v37  ;;  %v6071_v26 = vld [vmem:[%s7556_s4 + $0x20] sm:$0xff]   ;;  %v6074_v59 = vld [vmem:[%s7556_s4 + $0x38] sm:$0xff]   ;;  %v4848_v22 = vld [vmem:[%s7557_s5 + $0xb] ss:$0 sm:$0xff] }
 0x2f0   : > { %v3322_v57 = vmax.f32 %v3314_v50, 0.0  ;;  %5448 = vmatpush3.bf16.msra.mxu0 %v6067_v37 }
 0x2f1   : > { %v3321_v58 = vmax.f32 %v3313_v54, 0.0  ;;  %5347 = vmatprep.mubr.bf16.mxu1 %v3467_v13  ;;  %5449 = vmatprep.subr.bf16.mxu0 %v6068_v6 }
 0x2f2   : > { %5354 = vmatpush3.bf16.msra.mxu1 %v6036_v18  ;;  %v6073_v18 = vld [vmem:[%s7556_s4 + $0x30] sm:$0xff]  }
 0x2f3   : > { %5355 = vmatprep.subr.bf16.mxu1 %v6037_v24  ;;  %v3468_v40 = vpack.c.bf16 %v3322_v57, %v3321_v58 }
 0x2f4   : > { %5450 = vmatpush3.bf16.msra.mxu0 %v6068_v6 }
 0x2f5   : > { %5348 = vmatmul.mubr.bf16.gmra.mrb[52].mxu1 %v3468_v40  ;;  %5451 = vmatprep.subr.bf16.mxu0 %v6069_v45 }
 0x2f6   : > { %5356 = vmatpush3.bf16.msra.mxu1 %v6037_v24  ;;  %5367 = vmatprep.mubr.bf16.mxu1 %v6930_v60  ;;  %v6070_v60 = vld [vmem:[%s7556_s4 + $0x18] sm:$0xff]  }
 0x2f7   : > { %5357 = vmatprep.subr.bf16.mxu1 %v6038_v23 }
 0x2f8   : > { %5452 = vmatpush3.bf16.msra.mxu0 %v6069_v45 }
 0x2f9   : > { %5453 = vmatprep.subr.bf16.mxu0 %v6070_v60 }
 0x2fa   : > { %5358 = vmatpush3.bf16.msra.mxu1 %v6038_v23 }
 0x2fb   : > { %5359 = vmatprep.subr.bf16.mxu1 %v6039_v25 }
 0x2fc   : > { %5454 = vmatpush3.bf16.msra.mxu0 %v6070_v60 }
 0x2fd   : > { %5455 = vmatprep.subr.bf16.mxu0 %v6071_v26 }
 0x2fe   : > { %5360 = vmatpush3.bf16.msra.mxu1 %v6039_v25 }
 0x2ff   : > { %5361 = vmatprep.subr.bf16.mxu1 %v6040_v33 }
 0x300   : > { %5456 = vmatpush3.bf16.msra.mxu0 %v6071_v26 }
 0x301   : > { %5457 = vmatprep.subr.bf16.mxu0 %v6072_v17 }
 0x302   : > { %5362 = vmatpush3.bf16.msra.mxu1 %v6040_v33 }
 0x303   : > { %5363 = vmatprep.subr.bf16.mxu1 %v6041_v29 }
 0x304   : > { %5458 = vmatpush3.bf16.msra.mxu0 %v6072_v17 }
 0x305   : > { %5459 = vmatprep.subr.bf16.mxu0 %v6073_v18 }
 0x306   : > { %5364 = vmatpush3.bf16.msra.mxu1 %v6041_v29 }
 0x307   : > { %5365 = vmatprep.subr.bf16.mxu1 %v6042_v43 }
 0x308   : > { %5460 = vmatpush3.bf16.msra.mxu0 %v6073_v18 }
 0x309   : > { %5461 = vmatprep.subr.bf16.mxu0 %v6074_v59 }
 0x30a   : > { %5366 = vmatpush3.bf16.msra.mxu1 %v6042_v43 }
 0x30b   : > { %5375 = vmatprep.subr.bf16.mxu1 %v6043_v8 }
 0x30c   : > { %5462 = vmatpush3.bf16.msra.mxu0 %v6074_v59 }
 0x30d   : > { %5368 = vmatmul.mubr.bf16.vlgmr.msra.gmra.mrb[48].mxu1 %v6937_v10  ;;  %v6047_v10 = vld [vmem:[%s7555_s3 + $0xa0] sm:$0xff]  }
 0x30e   : > { %5371 = vmatprep.mubr.bf16.mxu1 %v6941_v63  ;;  %5376 = vmatpush3.bf16.msra.mxu1 %v6043_v8  ;;  %v6048_v63 = vld [vmem:[%s7555_s3 + $0xa8] sm:$0xff]  }
 0x30f   : > { %5377 = vmatprep.subr.bf16.mxu1 %v6044_v39 }
 0x312   : > { %5378 = vmatpush3.bf16.msra.mxu1 %v6044_v39 }
 0x313   : > { %5379 = vmatprep.subr.bf16.mxu1 %v6045_v30 }
 0x315   : > { %5372 = vmatmul.mubr.bf16.gmra.mrb[52].mxu1 %v6948_v28  ;;  %v6049_v28 = vld [vmem:[%s7555_s3 + $0xb0] sm:$0xff]  }
 0x316   : > { %5380 = vmatpush3.bf16.msra.mxu1 %v6045_v30  ;;  %5391 = vmatprep.mubr.bf16.mxu1 %v7282_v49  ;;  %v6050_v49 = vld [vmem:[%s7555_s3 + $0xb8] sm:$0xff]  }
 0x317   : > { %5381 = vmatprep.subr.bf16.mxu1 %v6046_v32 }
 0x31a   : > { %5382 = vmatpush3.bf16.msra.mxu1 %v6046_v32 }
 0x31b   : > { %5383 = vmatprep.subr.bf16.mxu1 %v6047_v10 }
 0x31e   : > { %5384 = vmatpush3.bf16.msra.mxu1 %v6047_v10 }
 0x31f   : > { %5385 = vmatprep.subr.bf16.mxu1 %v6048_v63 }
 0x322   : > { %5386 = vmatpush3.bf16.msra.mxu1 %v6048_v63 }
 0x323   : > { %5387 = vmatprep.subr.bf16.mxu1 %v6049_v28 }
 0x326   : > { %5388 = vmatpush3.bf16.msra.mxu1 %v6049_v28 }
 0x327   : > { %5389 = vmatprep.subr.bf16.mxu1 %v6050_v49 }
 0x32a   : > { %5390 = vmatpush3.bf16.msra.mxu1 %v6050_v49 }
 0x32b   : > { %5399 = vmatprep.subr.bf16.mxu1 %v6051_v42 }
 0x32d   : > { %5392 = vmatmul.mubr.bf16.vlgmr.msra.gmra.mrb[48].mxu1 %v7179_v34  ;;  %v6055_v34 = vld [vmem:[%s7555_s3 + $0xe0] sm:$0xff]  }
 0x32e   : > { %5395 = vmatprep.mubr.bf16.mxu1 %v7342_v27  ;;  %5400 = vmatpush3.bf16.msra.mxu1 %v6051_v42  ;;  %v3430_v27 = vrot.slane %v3429_v46, 1 }
 0x32f   : > { %5401 = vmatprep.subr.bf16.mxu1 %v6052_v38 }
 0x330   : > { %v3431_v47 = vadd.f32 %v3430_v27, %v3429_v46 }
 0x332   : > { %5402 = vmatpush3.bf16.msra.mxu1 %v6052_v38 }
 0x333   : > { %5403 = vmatprep.subr.bf16.mxu1 %v6053_v2 }
 0x335   : > { %5396 = vmatmul.mubr.bf16.gmra.mrb[52].mxu1 %v7356_v31  ;;  %v6057_v31 = vld [vmem:[%s7555_s3 + $0xf0] sm:$0xff]  }
 0x336   : > { %5404 = vmatpush3.bf16.msra.mxu1 %v6053_v2  ;;  %5415 = vmatprep.mubr.bf16.mxu1 %v7284_v53  ;;  %v3433_v53 = vmul.f32 0.015625, %v3431_v47 }
 0x337   : > { %5405 = vmatprep.subr.bf16.mxu1 %v6054_v44 }
 0x338   : > { %v3436_v61 = vmul.f32 %v4739_v41, %v3433_v53 }
 0x33a   : > { %5406 = vmatpush3.bf16.msra.mxu1 %v6054_v44  ;;  %v3439_v55 = vadd.f32 %v4740_v5, %v3436_v61 }
 0x33b   : > { %5407 = vmatprep.subr.bf16.mxu1 %v6055_v34 }
 0x33c   : > { %v3440_v52 = vmax.f32 %v3439_v55, 0.0 }
 0x33e   : > { %5408 = vmatpush3.bf16.msra.mxu1 %v6055_v34  ;;  %v3444_v35 = vrot.slane %v3440_v52, %v3443_v1 }
 0x33f   : > { %5409 = vmatprep.subr.bf16.mxu1 %v6056_v0 }
 0x340   : > { %v3996_v4 = vpack.c.bf16 %v3444_v35, %v3444_v35 }
 0x342   : > { %5410 = vmatpush3.bf16.msra.mxu1 %v6056_v0  ;;  %v4850_v0 = vld [vmem:[%s7557_s5 + $0xc] ss:$0 sm:$0xff] }
 0x343   : > { %5411 = vmatprep.subr.bf16.mxu1 %v6057_v31 }
 0x346   : > { %5412 = vmatpush3.bf16.msra.mxu1 %v6057_v31 }
 0x347   : > { %5413 = vmatprep.subr.bf16.mxu1 %v6058_v56 }
 0x34a   : > { %5414 = vmatpush3.bf16.msra.mxu1 %v6058_v56 }
 0x34b   : > { %5423 = vmatprep.subr.bf16.mxu1 %v6059_v7 }
 0x34d   : > { %5416 = vmatmul.mubr.bf16.vlgmr.msra.gmra.mrb[48].mxu1 %v7183_v36  ;;  %v6063_v36 = vld [vmem:[%s7555_s3 + $0x120] sm:$0xff]  }
 0x34e   : > { %5419 = vmatprep.mubr.bf16.mxu1 %v7344_v16  ;;  %5424 = vmatpush3.bf16.msra.mxu1 %v6059_v7  ;;  %v6064_v16 = vld [vmem:[%s7555_s3 + $0x128] sm:$0xff]  }
 0x34f   : > { %5425 = vmatprep.subr.bf16.mxu1 %v6060_v15 }
 0x352   : > { %5426 = vmatpush3.bf16.msra.mxu1 %v6060_v15 }
 0x353   : > { %5427 = vmatprep.subr.bf16.mxu1 %v6061_v20 }
 0x355   : > { %5420 = vmatmul.mubr.bf16.gmra.mrb[52].mxu1 %v7358_v12  ;;  %v6066_v12 = vld [vmem:[%s7555_s3 + $0x138] sm:$0xff]  }
 0x356   : > { %5428 = vmatpush3.bf16.msra.mxu1 %v6061_v20  ;;  %5439 = vmatprep.mubr.bf16.mxu1 %v3996_v4 }
 0x357   : > { %5429 = vmatprep.subr.bf16.mxu1 %v6062_v14 }
 0x35a   : > { %5430 = vmatpush3.bf16.msra.mxu1 %v6062_v14 }
 0x35b   : > { %5431 = vmatprep.subr.bf16.mxu1 %v6063_v36 }
 0x35e   : > { %5432 = vmatpush3.bf16.msra.mxu1 %v6063_v36 }
 0x35f   : > { %5433 = vmatprep.subr.bf16.mxu1 %v6064_v16 }
 0x362   : > { %5434 = vmatpush3.bf16.msra.mxu1 %v6064_v16 }
 0x363   : > { %5435 = vmatprep.subr.bf16.mxu1 %v6065_v62 }
 0x366   : > { %5436 = vmatpush3.bf16.msra.mxu1 %v6065_v62 }
 0x367   : > { %5437 = vmatprep.subr.bf16.mxu1 %v6066_v12 }
 0x36a   : > { %5438 = vmatpush3.bf16.msra.mxu1 %v6066_v12 }
 0x36d   : > { %5440 = vmatmul.mubr.bf16.vlgmr.msra.gmra.mrb[48].mxu1 %v3996_v4 }
 0x36e   : > { %5443 = vmatprep.mubr.bf16.mxu1 %v3996_v4 }
 0x375   : > { %5444 = vmatmul.mubr.bf16.gmra.mrb[52].mxu1 %v3996_v4 }
 0x440   : > { %v5441_v21 = vpop.f32.mrb[48].mxu1 }
 0x441   : > { %v4145_v50 = vmul.f32 %v5441_v21, %v4846_v19  ;;  %v4096_v54 = vpop.f32.mrb[49].mxu1 }
 0x442   : > { %v4143_v13 = vmul.f32 %v4846_v19, %v4096_v54  ;;  %v5442_v24 = vpop.f32.mrb[50].mxu1 }
 0x443   : > { %v4161_v57 = vadd.f32 %v4848_v22, %v4145_v50  ;;  %v4146_v58 = vmul.f32 %v5442_v24, %v4846_v19  ;;  %v4099_v40 = vpop.f32.mrb[51].mxu1 }
 0x444   : > { %v4159_v23 = vadd.f32 %v4848_v22, %v4143_v13  ;;  %v4144_v37 = vmul.f32 %v4846_v19, %v4099_v40 }
 0x445   : > { %v4162_v6 = vadd.f32 %v4848_v22, %v4146_v58  ;;  %v4169_v45 = vmax.f32 %v4161_v57, 0.0 }
 0x446   : > { %v4160_v25 = vadd.f32 %v4848_v22, %v4144_v37  ;;  %v4167_v60 = vmax.f32 %v4159_v23, 0.0 }
 0x447   : > { %v4170_v33 = vmax.f32 %v4162_v6, 0.0 }
 0x448   : > { %v4168_v29 = vmax.f32 %v4160_v25, 0.0  ;;  %v5445_v26 = vpop.f32.mrb[52].mxu1 }
 0x449   : > { %v4176_v43 = vpack.c.bf16 %v4170_v33, %v4169_v45  ;;  %v4149_v8 = vmul.f32 %v5445_v26, %v4846_v19  ;;  %v4112_v39 = vpop.f32.mrb[53].mxu1 }
 0x44a   : > { %v4147_v30 = vmul.f32 %v4846_v19, %v4112_v39  ;;  %v5446_v32 = vpop.f32.mrb[54].mxu1  ;;  %v4175_v10 = vpack.c.bf16 %v4168_v29, %v4167_v60 }
 0x44b   : > { %v4165_v63 = vadd.f32 %v4848_v22, %v4149_v8  ;;  %v4150_v28 = vmul.f32 %v5446_v32, %v4846_v19  ;;  %v4115_v49 = vpop.f32.mrb[55].mxu1 }
 0x44c   : > { %v4163_v42 = vadd.f32 %v4848_v22, %v4147_v30  ;;  %v4148_v51 = vmul.f32 %v4846_v19, %v4115_v49  ;;  %5463 = vmatprep.mubr.bf16.mxu0 %v4175_v10 }
 0x44d   : > { %v4166_v38 = vadd.f32 %v4848_v22, %v4150_v28  ;;  %5464 = vmatmul.mubr.bf16.vlgmr.msra.gmra.mrb[80].mxu0 %v4176_v43  ;;  %v4173_v2 = vmax.f32 %v4165_v63, 0.0 }
 0x44e   : > { %v4164_v48 = vadd.f32 %v4848_v22, %v4148_v51  ;;  %v4171_v44 = vmax.f32 %v4163_v42, 0.0 }
 0x44f   : > { %v4174_v9 = vmax.f32 %v4166_v38, 0.0 }
 0x450   : > { %v4172_v46 = vmax.f32 %v4164_v48, 0.0 }
 0x451   : > { %v4178_v34 = vpack.c.bf16 %v4174_v9, %v4173_v2 }
 0x452   : > { %v4177_v27 = vpack.c.bf16 %v4172_v46, %v4171_v44 }
 0x454   : > { %5467 = vmatprep.mubr.bf16.mxu0 %v4177_v27 }
 0x455   : > { %5468 = vmatmul.mubr.bf16.gmra.mrb[84].mxu0 %v4178_v34 }
 0x520   : > { %v5465_v47 = vpop.f32.mrb[80].mxu0 }
 0x521   : > { %v4294_v31 = vadd.f32 %v5465_v47, %v4850_v0  ;;  %v4285_v53 = vpop.f32.mrb[81].mxu0 }
 0x522   : > { %v4286_v41 = vadd.f32 %v4850_v0, %v4285_v53  ;;  %v5466_v56 = vpop.f32.mrb[82].mxu0 }
 0x523   : > { %4318 = vst [vmem:[%s251_s17 + $0x10] sm:$0xff] %v4294_v31  ;;  %v4297_v61 = vadd.f32 %v5466_v56, %v4850_v0  ;;  %v4288_v3 = vpop.f32.mrb[83].mxu0 }
 0x524   : > { %4316 = vst [vmem:[%s251_s17] sm:$0xff] %v4286_v41  ;;  %v4289_v5 = vadd.f32 %v4850_v0, %v4288_v3 }
 0x525   : > { %4319 = vst [vmem:[%s251_s17 + $0x18] sm:$0xff] %v4297_v61 }
 0x526   : > { %4317 = vst [vmem:[%s251_s17 + $0x8] sm:$0xff] %v4289_v5 }
 0x528   : > { %v5469_v7 = vpop.f32.mrb[84].mxu0 }
 0x529   : > { %v4310_v55 = vadd.f32 %v5469_v7, %v4850_v0  ;;  %v4301_v11 = vpop.f32.mrb[85].mxu0 }
 0x52a   : > { %v4302_v15 = vadd.f32 %v4850_v0, %v4301_v11  ;;  %v5470_v52 = vpop.f32.mrb[86].mxu0 }
 0x52b   : > { %4322 = vst [vmem:[%s251_s17 + $0x30] sm:$0xff] %v4310_v55  ;;  %v4313_v1 = vadd.f32 %v5470_v52, %v4850_v0  ;;  %v4304_v20 = vpop.f32.mrb[87].mxu0 }
 0x52c   : > { %4320 = vst [vmem:[%s251_s17 + $0x20] sm:$0xff] %v4302_v15  ;;  %v4305_v35 = vadd.f32 %v4850_v0, %v4304_v20 }
 0x52d   : > { %4323 = vst [vmem:[%s251_s17 + $0x38] sm:$0xff] %v4313_v1 }
 0x52e   : > { %4321 = vst [vmem:[%s251_s17 + $0x28] sm:$0xff] %v4305_v35 }
 0x52f PF: > { %s16_s21 = sadd.s32 1, %s6089_s21  }
 0x530   : > { %p13_p4 = scmp.ge.s32.totalorder %s16_s21, 4  }
 0x532   :  { %15 = sbr.rel (!%p13_p4) target bundleno = 1 (0x1), region = 97 }

</bundles_post_ra>
